<compile_context>
chip_gen: v7x
topology: tpu7x:2x2x1
jax: 0.10.0
libtpu: 0.0.40
codegen_flags: <defaults>
</compile_context>

<pallas_src>
import math
from math import ceil

import jax
import jax.numpy as jnp
from jax.experimental import pallas as pl
from jax.experimental.pallas import tpu as pltpu

_LOG2 = math.log(2.0)
_LANE = 128
_SUBLANE = 8


def _round_up(x, m):
    return ((x + m - 1) // m) * m


def _softplus(x):
    # Stable softplus WITHOUT the -log(2) shift: the shift is folded into the
    # bias of the following linear layer; the final activation subtracts it.
    return jnp.maximum(x, 0.0) + jnp.log1p(jnp.exp(-jnp.abs(x)))


# ----------------------------- fused Pallas kernel -------------------------- #
def _make_fused_kernel(n_res_atomic, n_res_output, n_read_out,
                       zero_last_linear, matmul_dtype):
    """Unrolled PhysModule layer stack; one atom tile per grid step.

    Ref order: x,
               [res_w1s, res_b1s, res_w2s, res_b2s]   (if n_res > 0, stacked)
               [w, b] * n_read_out,
               [lin_w]                                 (if not zero_last)
               vi_out, embed_b4_ss_out, [out_out]      (if not zero_last)
    """
    n_res = n_res_atomic + n_res_output

    def mm(a, w):
        if matmul_dtype is not None:
            a = a.astype(matmul_dtype)
            w = w.astype(matmul_dtype)
        return jnp.dot(a, w, preferred_element_type=jnp.float32)

    def kernel(*refs):
        it = iter(refs)
        x_ref = next(it)
        if n_res > 0:
            w1s_ref = next(it)
            b1s_ref = next(it)
            w2s_ref = next(it)
            b2s_ref = next(it)

            def residual(x, li):
                # x + W2 @ ssp(W1 @ ssp(x) + b1) + b2, with the -log2 of each
                # ssp pre-folded into b1 / b2.
                y = mm(_softplus(x), w1s_ref[li]) + b1s_ref[li]
                y = mm(_softplus(y), w2s_ref[li]) + b2s_ref[li]
                return x + y

        ro_refs = [(next(it), next(it)) for _ in range(n_read_out)]
        lin_w_ref = None if zero_last_linear else next(it)
        vi_ref = next(it)
        emb_ref = next(it)
        out_ref = None if zero_last_linear else next(it)

        x = x_ref[...]

        # atomic residual stack -> runtime_vars[self.embed_name] ('vi')
        for li in range(n_res_atomic):
            x = residual(x, li)
        vi_ref[...] = x

        # OutputLayer residual stack
        for li in range(n_res_atomic, n_res):
            x = residual(x, li)

        # read-out stack: out = ssp(out) @ W + b'   (dim decays by /2 each step)
        for w_ref, b_ref in ro_refs:
            x = mm(_softplus(x), w_ref[...]) + b_ref[...]

        emb = _softplus(x) - _LOG2            # true shifted-softplus output
        emb_ref[...] = emb

        if not zero_last_linear:
            out_ref[...] = mm(emb, lin_w_ref[...])

    return kernel


# ----------------------------- wrapper -------------------------------------- #
def _pad2(a, rows, cols):
    r, c = a.shape
    if r == rows and c == cols:
        return a
    return jnp.pad(a, ((0, rows - r), (0, cols - c)))


def _vmem_capacity_bytes():
    try:
        return int(pltpu.get_tpu_info().vmem_capacity_bytes)
    except Exception:
        return 64 << 20          # conservative default: v7x per-TensorCore VMEM


def phys_module_forward(interacted_x, params, *, tile_n=1024, matmul_dtype=None,
                        pad_features=True):
    """PhysModule.forward starting from interacted_x ([N, F]) — one pallas_call."""
    N, F = interacted_x.shape
    n_res_atomic = len(params["res_atomic"])
    n_res_output = len(params["res_output"])
    n_res = n_res_atomic + n_res_output
    n_read_out = len(params["read_out"])
    zero_last = bool(params["zero_last_linear"])
    n_output = params["lin_w"].shape[1]
    d_last = params["read_out"][-1][0].shape[1] if n_read_out > 0 else F

    pad = (lambda d: _round_up(d, _LANE)) if pad_features else (lambda d: d)
    Fp = pad(F)

    # ---- pack / zero-pad weights, fold -log(2) of each pre-matmul ssp into biases
    weight_arrays = []
    if n_res > 0:
        w1s, b1s, w2s, b2s = [], [], [], []
        for (w1, b1, w2, b2) in list(params["res_atomic"]) + list(params["res_output"]):
            w1s.append(_pad2(w1, Fp, Fp))
            b1s.append(_pad2(b1 - _LOG2 * jnp.sum(w1, axis=0, keepdims=True), 1, Fp))
            w2s.append(_pad2(w2, Fp, Fp))
            b2s.append(_pad2(b2 - _LOG2 * jnp.sum(w2, axis=0, keepdims=True), 1, Fp))
        weight_arrays += [jnp.stack(w1s), jnp.stack(b1s), jnp.stack(w2s), jnp.stack(b2s)]

    ro_dims_p = []
    d_in_p = Fp
    for (w, b) in params["read_out"]:
        d_out = w.shape[1]
        d_out_p = pad(d_out)
        weight_arrays.append(_pad2(w, d_in_p, d_out_p))
        weight_arrays.append(_pad2(b - _LOG2 * jnp.sum(w, axis=0, keepdims=True), 1, d_out_p))
        ro_dims_p.append((d_in_p, d_out_p))
        d_in_p = d_out_p
    d_last_p = d_in_p

    n_out_p = pad(n_output)
    if not zero_last:
        weight_arrays.append(_pad2(params["lin_w"], d_last_p, n_out_p))

    x_p = _pad2(interacted_x.astype(jnp.float32), N, Fp)

    # ---- atom-axis tiling: >= 2 grid steps when possible (v7x megacore);
    #      shrink the tile if the VMEM estimate exceeds the per-chip budget.
    weight_bytes = sum(int(a.size) * a.dtype.itemsize for a in weight_arrays)
    out_cols = Fp + d_last_p + (0 if zero_last else n_out_p)

    def vmem_estimate(tn_):
        io = 2 * 4 * tn_ * (Fp + out_cols)        # double-buffered x + output tiles
        temps = 6 * 4 * tn_ * Fp                  # softplus / matmul temporaries
        return 2 * weight_bytes + io + temps + (4 << 20)   # + Mosaic scratch margin

    budget = int(0.70 * _vmem_capacity_bytes())
    tn = min(_round_up(int(tile_n), _SUBLANE),
             max(_SUBLANE, _round_up(pl.cdiv(N, 2), _SUBLANE)))
    while vmem_estimate(tn) > budget and tn > _SUBLANE:
        new_tn = max(_SUBLANE, _round_up(tn // 2, _SUBLANE))
        if new_tn >= tn:
            break
        tn = new_tn
    grid = (pl.cdiv(N, tn),)

    # ---- block specs
    def weight_spec(arr, pipeline_mode):
        nd = arr.ndim
        idx = lambda i, _nd=nd: (0,) * _nd
        if pipeline_mode is None:
            return pl.BlockSpec(arr.shape, idx)
        return pl.BlockSpec(arr.shape, idx, pipeline_mode=pipeline_mode)

    x_spec = pl.BlockSpec((tn, Fp), lambda i: (i, 0))

    out_shape = [jax.ShapeDtypeStruct((N, Fp), jnp.float32),         # vi
                 jax.ShapeDtypeStruct((N, d_last_p), jnp.float32)]   # embed_b4_ss
    out_specs = [pl.BlockSpec((tn, Fp), lambda i: (i, 0)),
                 pl.BlockSpec((tn, d_last_p), lambda i: (i, 0))]
    if not zero_last:
        out_shape.append(jax.ShapeDtypeStruct((N, n_out_p), jnp.float32))
        out_specs.append(pl.BlockSpec((tn, n_out_p), lambda i: (i, 0)))

    # ---- advisory cost estimate (helps XLA schedule around the custom call)
    flops = N * n_res * 2 * (2 * Fp * Fp)
    trans_elems = N * n_res * 2 * Fp
    for (di_p, do_p) in ro_dims_p:
        flops += N * 2 * di_p * do_p
        trans_elems += N * di_p
    trans_elems += N * d_last_p
    if not zero_last:
        flops += N * 2 * d_last_p * n_out_p
    cost = pl.CostEstimate(flops=int(flops),
                           transcendentals=int(2 * trans_elems),
                           bytes_accessed=int(4 * N * (Fp + out_cols) + weight_bytes))

    kernel = _make_fused_kernel(n_res_atomic, n_res_output, n_read_out,
                                zero_last, matmul_dtype)

    compiler_params = pltpu.CompilerParams(
        # Atom tiles are independent -> megacore sharding across TensorCores.
        # TODO(synk): if plain "parallel" does not shard on v7x, switch to
        #             pltpu.CORE_PARALLEL on a leading size-2 grid axis.
        dimension_semantics=("parallel",),
        vmem_limit_bytes=budget,
    )

    def run(weight_mode):
        in_specs = [x_spec] + [weight_spec(a, weight_mode) for a in weight_arrays]
        res = pl.pallas_call(
            kernel,
            grid=grid,
            out_shape=tuple(out_shape),
            in_specs=in_specs,
            out_specs=tuple(out_specs),
            compiler_params=compiler_params,
            cost_estimate=cost,
        )(x_p, *weight_arrays)
        jax.block_until_ready(res)
        return res

    # Weights have constant index maps -> fetched once; single-buffer them to
    # halve their VMEM footprint.  Fall back to default double-buffering if the
    # installed JAX rejects Buffered(1).
    single = pl.Buffered(1) if hasattr(pl, "Buffered") else None
    try:
        results = run(single)
    except Exception:
        if single is None:
            raise
        results = run(None)

    vi_p, emb_p = results[0], results[1]
    vi = vi_p[:, :F] if Fp != F else vi_p
    emb = emb_p[:, :d_last] if d_last_p != d_last else emb_p
    if zero_last:
        # zero_last_linear=True + bias=False  =>  out is exactly zeros (init-time
        # weights); produced in the wrapper so the kernel never does a
        # narrow-lane (width n_output) masked store.
        out = jnp.zeros((N, n_output), jnp.float32)
    else:
        out_p = results[2]
        out = out_p[:, :n_output] if n_out_p != n_output else out_p

    regularization = 0.0    # no concrete dropout / batch norm in this config
    return out, regularization, emb, vi


# ----------------------------- pure-JAX reference --------------------------- #
def _ssp_ref(x):
    return jax.nn.softplus(x) - _LOG2


def phys_module_reference(x, params):
    def residual(t, w1, b1, w2, b2):
        y = _ssp_ref(t) @ w1 + b1
        y = _ssp_ref(y) @ w2 + b2
        return t + y

    t = x
    for layer in params["res_atomic"]:
        t = residual(t, *layer)
    vi = t
    out = t
    for layer in params["res_output"]:
        out = residual(out, *layer)
    for (w, b) in params["read_out"]:
        out = _ssp_ref(out) @ w + b
    emb = _ssp_ref(out)
    final = emb @ params["lin_w"]
    return final, emb, vi


# ----------------------------- parameter init ------------------------------- #
def _linear_params(key, fan_in, fan_out):
    kw, kb = jax.random.split(key)
    bound = 1.0 / math.sqrt(fan_in)
    w = jax.random.uniform(kw, (fan_in, fan_out), jnp.float32, -bound, bound)
    b = jax.random.uniform(kb, (1, fan_out), jnp.float32, -bound, bound)
    return w, b


def make_params(key, F, n_output, n_res_atomic, n_res_output, n_read_out):
    params = {"res_atomic": [], "res_output": [], "read_out": []}
    for _ in range(n_res_atomic):
        key, k1, k2 = jax.random.split(key, 3)
        w1, b1 = _linear_params(k1, F, F)
        w2, b2 = _linear_params(k2, F, F)
        params["res_atomic"].append((w1, b1, w2, b2))
    for _ in range(n_res_output):
        key, k1, k2 = jax.random.split(key, 3)
        w1, b1 = _linear_params(k1, F, F)
        w2, b2 = _linear_params(k2, F, F)
        params["res_output"].append((w1, b1, w2, b2))
    last_dim = F
    for _ in range(n_read_out):
        this_dim = ceil(last_dim / 2)          # dim_decay = True
        key, k1 = jax.random.split(key)
        w, b = _linear_params(k1, last_dim, this_dim)
        params["read_out"].append((w, b))
        last_dim = this_dim
    # zero_last_linear=True, bias=False
    params["lin_w"] = jnp.zeros((last_dim, n_output), jnp.float32)
    params["zero_last_linear"] = True
    return params


# ----------------------------- main ------------------------------------------ #
if __name__ == "__main__":
    N_ATOMS, F = 16, 32
    N_OUTPUT = 2
    N_RES_ATOMIC, N_RES_OUTPUT, N_READ_OUT = 2, 1, 1

    key = jax.random.PRNGKey(0)
    key, kx, kp = jax.random.split(key, 3)

    # interacted_x = InteractionModule output (see TODO at top of file)
    interacted_x = jax.random.normal(kx, (N_ATOMS, F), jnp.float32)
    params = make_params(kp, F, N_OUTPUT, N_RES_ATOMIC, N_RES_OUTPUT, N_READ_OUT)

    out, regularization, embed_b4_ss, vi = phys_module_forward(interacted_x, params)
    jax.block_until_ready((out, embed_b4_ss, vi))

    ref_out, ref_emb, ref_vi = phys_module_reference(interacted_x, params)

    assert out.shape == (N_ATOMS, N_OUTPUT)
    assert embed_b4_ss.shape == (N_ATOMS, ceil(F / 2))
    assert vi.shape == (N_ATOMS, F)
    assert regularization == 0.0
    # zero_last_linear=True + bias=False  =>  out must be exactly zeros
    assert bool(jnp.all(out == 0.0))
    # numerics vs pure-JAX reference (bias-folded / padded kernel, f32 path)
    assert bool(jnp.allclose(vi, ref_vi, rtol=1e-4, atol=1e-4))
    assert bool(jnp.allclose(embed_b4_ss, ref_emb, rtol=1e-4, atol=1e-4))
    assert bool(jnp.allclose(out, ref_out, rtol=1e-4, atol=1e-4))

    print("KERNEL_OK")
</pallas_src>

<mosaic_0001>
module attributes {stable_mosaic.version = 11 : i64} {
  func.func @kernel(%arg0: i32, %arg1: memref<8x128xf32, #tpu.memory_space<vmem>>, %arg2: memref<3x128x128xf32, #tpu.memory_space<vmem>>, %arg3: memref<3x1x128xf32, #tpu.memory_space<vmem>>, %arg4: memref<3x128x128xf32, #tpu.memory_space<vmem>>, %arg5: memref<3x1x128xf32, #tpu.memory_space<vmem>>, %arg6: memref<128x128xf32, #tpu.memory_space<vmem>>, %arg7: memref<1x128xf32, #tpu.memory_space<vmem>>, %arg8: memref<8x128xf32, #tpu.memory_space<vmem>>, %arg9: memref<8x128xf32, #tpu.memory_space<vmem>>) attributes {dimension_semantics = [#tpu.dimension_semantics<parallel>], iteration_bounds = array<i64: 2>, scalar_prefetch = 0 : i64, scratch_operands = 0 : i64, tpu.core_type = #tpu.core_type<tc>, window_params = [{transform_indices = @transform_0, window_bounds = array<i64: 8, 128>}, {pipeline_mode = #tpu.pipeline_mode<synchronous>, transform_indices = @transform_1, window_bounds = array<i64: 3, 128, 128>}, {pipeline_mode = #tpu.pipeline_mode<synchronous>, transform_indices = @transform_2, window_bounds = array<i64: 3, 1, 128>}, {pipeline_mode = #tpu.pipeline_mode<synchronous>, transform_indices = @transform_3, window_bounds = array<i64: 3, 128, 128>}, {pipeline_mode = #tpu.pipeline_mode<synchronous>, transform_indices = @transform_4, window_bounds = array<i64: 3, 1, 128>}, {pipeline_mode = #tpu.pipeline_mode<synchronous>, transform_indices = @transform_5, window_bounds = array<i64: 128, 128>}, {pipeline_mode = #tpu.pipeline_mode<synchronous>, transform_indices = @transform_6, window_bounds = array<i64: 1, 128>}, {transform_indices = @transform_7, window_bounds = array<i64: 8, 128>}, {transform_indices = @transform_8, window_bounds = array<i64: 8, 128>}]} {
    %c0 = arith.constant 0 : index
    %c0_0 = arith.constant 0 : index
    %0 = vector.load %arg1[%c0, %c0_0] : memref<8x128xf32, #tpu.memory_space<vmem>>, vector<8x128xf32>
    %cst = arith.constant 0.000000e+00 : f32
    %1 = vector.broadcast %cst : f32 to vector<8x128xf32>
    %2 = arith.maximumf %0, %1 : vector<8x128xf32>
    %3 = math.absf %0 : vector<8x128xf32>
    %cst_1 = arith.constant 0.000000e+00 : f32
    %4 = vector.broadcast %cst_1 : f32 to vector<8x128xf32>
    %5 = arith.subf %4, %3 : vector<8x128xf32>
    %6 = math.exp %5 : vector<8x128xf32>
    %7 = math.log1p %6 : vector<8x128xf32>
    %8 = arith.addf %2, %7 : vector<8x128xf32>
    %c0_2 = arith.constant 0 : index
    %c0_3 = arith.constant 0 : index
    %c0_4 = arith.constant 0 : index
    %9 = vector.load %arg2[%c0_2, %c0_3, %c0_4] : memref<3x128x128xf32, #tpu.memory_space<vmem>>, vector<1x128x128xf32>
    %10 = vector.shape_cast %9 : vector<1x128x128xf32> to vector<128x128xf32>
    %cst_5 = arith.constant dense<0.000000e+00> : vector<8x128xf32>
    %11 = tpu.matmul %8, %10, %cst_5 {dimension_numbers = #tpu.dot_dimension_numbers<[1], [0], [0], [1], [0, 0, 1, 1], [], []>} : vector<8x128xf32>, vector<128x128xf32>, vector<8x128xf32> -> vector<8x128xf32>
    %c0_6 = arith.constant 0 : index
    %c0_7 = arith.constant 0 : index
    %c0_8 = arith.constant 0 : index
    %12 = vector.load %arg3[%c0_6, %c0_7, %c0_8] : memref<3x1x128xf32, #tpu.memory_space<vmem>>, vector<1x1x128xf32>
    %13 = vector.shape_cast %12 : vector<1x1x128xf32> to vector<1x128xf32>
    %14 = vector.broadcast %13 : vector<1x128xf32> to vector<8x128xf32>
    %15 = arith.addf %11, %14 : vector<8x128xf32>
    %cst_9 = arith.constant 0.000000e+00 : f32
    %16 = vector.broadcast %cst_9 : f32 to vector<8x128xf32>
    %17 = arith.maximumf %15, %16 : vector<8x128xf32>
    %18 = math.absf %15 : vector<8x128xf32>
    %cst_10 = arith.constant 0.000000e+00 : f32
    %19 = vector.broadcast %cst_10 : f32 to vector<8x128xf32>
    %20 = arith.subf %19, %18 : vector<8x128xf32>
    %21 = math.exp %20 : vector<8x128xf32>
    %22 = math.log1p %21 : vector<8x128xf32>
    %23 = arith.addf %17, %22 : vector<8x128xf32>
    %c0_11 = arith.constant 0 : index
    %c0_12 = arith.constant 0 : index
    %c0_13 = arith.constant 0 : index
    %24 = vector.load %arg4[%c0_11, %c0_12, %c0_13] : memref<3x128x128xf32, #tpu.memory_space<vmem>>, vector<1x128x128xf32>
    %25 = vector.shape_cast %24 : vector<1x128x128xf32> to vector<128x128xf32>
    %cst_14 = arith.constant dense<0.000000e+00> : vector<8x128xf32>
    %26 = tpu.matmul %23, %25, %cst_14 {dimension_numbers = #tpu.dot_dimension_numbers<[1], [0], [0], [1], [0, 0, 1, 1], [], []>} : vector<8x128xf32>, vector<128x128xf32>, vector<8x128xf32> -> vector<8x128xf32>
    %c0_15 = arith.constant 0 : index
    %c0_16 = arith.constant 0 : index
    %c0_17 = arith.constant 0 : index
    %27 = vector.load %arg5[%c0_15, %c0_16, %c0_17] : memref<3x1x128xf32, #tpu.memory_space<vmem>>, vector<1x1x128xf32>
    %28 = vector.shape_cast %27 : vector<1x1x128xf32> to vector<1x128xf32>
    %29 = vector.broadcast %28 : vector<1x128xf32> to vector<8x128xf32>
    %30 = arith.addf %26, %29 : vector<8x128xf32>
    %31 = arith.addf %0, %30 : vector<8x128xf32>
    %cst_18 = arith.constant 0.000000e+00 : f32
    %32 = vector.broadcast %cst_18 : f32 to vector<8x128xf32>
    %33 = arith.maximumf %31, %32 : vector<8x128xf32>
    %34 = math.absf %31 : vector<8x128xf32>
    %cst_19 = arith.constant 0.000000e+00 : f32
    %35 = vector.broadcast %cst_19 : f32 to vector<8x128xf32>
    %36 = arith.subf %35, %34 : vector<8x128xf32>
    %37 = math.exp %36 : vector<8x128xf32>
    %38 = math.log1p %37 : vector<8x128xf32>
    %39 = arith.addf %33, %38 : vector<8x128xf32>
    %c1 = arith.constant 1 : index
    %c0_20 = arith.constant 0 : index
    %c0_21 = arith.constant 0 : index
    %40 = vector.load %arg2[%c1, %c0_20, %c0_21] : memref<3x128x128xf32, #tpu.memory_space<vmem>>, vector<1x128x128xf32>
    %41 = vector.shape_cast %40 : vector<1x128x128xf32> to vector<128x128xf32>
    %cst_22 = arith.constant dense<0.000000e+00> : vector<8x128xf32>
    %42 = tpu.matmul %39, %41, %cst_22 {dimension_numbers = #tpu.dot_dimension_numbers<[1], [0], [0], [1], [0, 0, 1, 1], [], []>} : vector<8x128xf32>, vector<128x128xf32>, vector<8x128xf32> -> vector<8x128xf32>
    %c1_23 = arith.constant 1 : index
    %c0_24 = arith.constant 0 : index
    %c0_25 = arith.constant 0 : index
    %43 = vector.load %arg3[%c1_23, %c0_24, %c0_25] : memref<3x1x128xf32, #tpu.memory_space<vmem>>, vector<1x1x128xf32>
    %44 = vector.shape_cast %43 : vector<1x1x128xf32> to vector<1x128xf32>
    %45 = vector.broadcast %44 : vector<1x128xf32> to vector<8x128xf32>
    %46 = arith.addf %42, %45 : vector<8x128xf32>
    %cst_26 = arith.constant 0.000000e+00 : f32
    %47 = vector.broadcast %cst_26 : f32 to vector<8x128xf32>
    %48 = arith.maximumf %46, %47 : vector<8x128xf32>
    %49 = math.absf %46 : vector<8x128xf32>
    %cst_27 = arith.constant 0.000000e+00 : f32
    %50 = vector.broadcast %cst_27 : f32 to vector<8x128xf32>
    %51 = arith.subf %50, %49 : vector<8x128xf32>
    %52 = math.exp %51 : vector<8x128xf32>
    %53 = math.log1p %52 : vector<8x128xf32>
    %54 = arith.addf %48, %53 : vector<8x128xf32>
    %c1_28 = arith.constant 1 : index
    %c0_29 = arith.constant 0 : index
    %c0_30 = arith.constant 0 : index
    %55 = vector.load %arg4[%c1_28, %c0_29, %c0_30] : memref<3x128x128xf32, #tpu.memory_space<vmem>>, vector<1x128x128xf32>
    %56 = vector.shape_cast %55 : vector<1x128x128xf32> to vector<128x128xf32>
    %cst_31 = arith.constant dense<0.000000e+00> : vector<8x128xf32>
    %57 = tpu.matmul %54, %56, %cst_31 {dimension_numbers = #tpu.dot_dimension_numbers<[1], [0], [0], [1], [0, 0, 1, 1], [], []>} : vector<8x128xf32>, vector<128x128xf32>, vector<8x128xf32> -> vector<8x128xf32>
    %c1_32 = arith.constant 1 : index
    %c0_33 = arith.constant 0 : index
    %c0_34 = arith.constant 0 : index
    %58 = vector.load %arg5[%c1_32, %c0_33, %c0_34] : memref<3x1x128xf32, #tpu.memory_space<vmem>>, vector<1x1x128xf32>
    %59 = vector.shape_cast %58 : vector<1x1x128xf32> to vector<1x128xf32>
    %60 = vector.broadcast %59 : vector<1x128xf32> to vector<8x128xf32>
    %61 = arith.addf %57, %60 : vector<8x128xf32>
    %62 = arith.addf %31, %61 : vector<8x128xf32>
    %c0_35 = arith.constant 0 : index
    %c0_36 = arith.constant 0 : index
    %63 = vector.load %arg8[%c0_35, %c0_36] : memref<8x128xf32, #tpu.memory_space<vmem>>, vector<8x128xf32>
    tpu.vector_store %arg8[%c0_35, %c0_36], %62 {strides = array<i32>} : memref<8x128xf32, #tpu.memory_space<vmem>>, vector<8x128xf32>,
    %cst_37 = arith.constant 0.000000e+00 : f32
    %64 = vector.broadcast %cst_37 : f32 to vector<8x128xf32>
    %65 = arith.maximumf %62, %64 : vector<8x128xf32>
    %66 = math.absf %62 : vector<8x128xf32>
    %cst_38 = arith.constant 0.000000e+00 : f32
    %67 = vector.broadcast %cst_38 : f32 to vector<8x128xf32>
    %68 = arith.subf %67, %66 : vector<8x128xf32>
    %69 = math.exp %68 : vector<8x128xf32>
    %70 = math.log1p %69 : vector<8x128xf32>
    %71 = arith.addf %65, %70 : vector<8x128xf32>
    %c2 = arith.constant 2 : index
    %c0_39 = arith.constant 0 : index
    %c0_40 = arith.constant 0 : index
    %72 = vector.load %arg2[%c2, %c0_39, %c0_40] : memref<3x128x128xf32, #tpu.memory_space<vmem>>, vector<1x128x128xf32>
    %73 = vector.shape_cast %72 : vector<1x128x128xf32> to vector<128x128xf32>
    %cst_41 = arith.constant dense<0.000000e+00> : vector<8x128xf32>
    %74 = tpu.matmul %71, %73, %cst_41 {dimension_numbers = #tpu.dot_dimension_numbers<[1], [0], [0], [1], [0, 0, 1, 1], [], []>} : vector<8x128xf32>, vector<128x128xf32>, vector<8x128xf32> -> vector<8x128xf32>
    %c2_42 = arith.constant 2 : index
    %c0_43 = arith.constant 0 : index
    %c0_44 = arith.constant 0 : index
    %75 = vector.load %arg3[%c2_42, %c0_43, %c0_44] : memref<3x1x128xf32, #tpu.memory_space<vmem>>, vector<1x1x128xf32>
    %76 = vector.shape_cast %75 : vector<1x1x128xf32> to vector<1x128xf32>
    %77 = vector.broadcast %76 : vector<1x128xf32> to vector<8x128xf32>
    %78 = arith.addf %74, %77 : vector<8x128xf32>
    %cst_45 = arith.constant 0.000000e+00 : f32
    %79 = vector.broadcast %cst_45 : f32 to vector<8x128xf32>
    %80 = arith.maximumf %78, %79 : vector<8x128xf32>
    %81 = math.absf %78 : vector<8x128xf32>
    %cst_46 = arith.constant 0.000000e+00 : f32
    %82 = vector.broadcast %cst_46 : f32 to vector<8x128xf32>
    %83 = arith.subf %82, %81 : vector<8x128xf32>
    %84 = math.exp %83 : vector<8x128xf32>
    %85 = math.log1p %84 : vector<8x128xf32>
    %86 = arith.addf %80, %85 : vector<8x128xf32>
    %c2_47 = arith.constant 2 : index
    %c0_48 = arith.constant 0 : index
    %c0_49 = arith.constant 0 : index
    %87 = vector.load %arg4[%c2_47, %c0_48, %c0_49] : memref<3x128x128xf32, #tpu.memory_space<vmem>>, vector<1x128x128xf32>
    %88 = vector.shape_cast %87 : vector<1x128x128xf32> to vector<128x128xf32>
    %cst_50 = arith.constant dense<0.000000e+00> : vector<8x128xf32>
    %89 = tpu.matmul %86, %88, %cst_50 {dimension_numbers = #tpu.dot_dimension_numbers<[1], [0], [0], [1], [0, 0, 1, 1], [], []>} : vector<8x128xf32>, vector<128x128xf32>, vector<8x128xf32> -> vector<8x128xf32>
    %c2_51 = arith.constant 2 : index
    %c0_52 = arith.constant 0 : index
    %c0_53 = arith.constant 0 : index
    %90 = vector.load %arg5[%c2_51, %c0_52, %c0_53] : memref<3x1x128xf32, #tpu.memory_space<vmem>>, vector<1x1x128xf32>
    %91 = vector.shape_cast %90 : vector<1x1x128xf32> to vector<1x128xf32>
    %92 = vector.broadcast %91 : vector<1x128xf32> to vector<8x128xf32>
    %93 = arith.addf %89, %92 : vector<8x128xf32>
    %94 = arith.addf %62, %93 : vector<8x128xf32>
    %cst_54 = arith.constant 0.000000e+00 : f32
    %95 = vector.broadcast %cst_54 : f32 to vector<8x128xf32>
    %96 = arith.maximumf %94, %95 : vector<8x128xf32>
    %97 = math.absf %94 : vector<8x128xf32>
    %cst_55 = arith.constant 0.000000e+00 : f32
    %98 = vector.broadcast %cst_55 : f32 to vector<8x128xf32>
    %99 = arith.subf %98, %97 : vector<8x128xf32>
    %100 = math.exp %99 : vector<8x128xf32>
    %101 = math.log1p %100 : vector<8x128xf32>
    %102 = arith.addf %96, %101 : vector<8x128xf32>
    %c0_56 = arith.constant 0 : index
    %c0_57 = arith.constant 0 : index
    %103 = vector.load %arg6[%c0_56, %c0_57] : memref<128x128xf32, #tpu.memory_space<vmem>>, vector<128x128xf32>
    %cst_58 = arith.constant dense<0.000000e+00> : vector<8x128xf32>
    %104 = tpu.matmul %102, %103, %cst_58 {dimension_numbers = #tpu.dot_dimension_numbers<[1], [0], [0], [1], [0, 0, 1, 1], [], []>} : vector<8x128xf32>, vector<128x128xf32>, vector<8x128xf32> -> vector<8x128xf32>
    %c0_59 = arith.constant 0 : index
    %c0_60 = arith.constant 0 : index
    %105 = vector.load %arg7[%c0_59, %c0_60] : memref<1x128xf32, #tpu.memory_space<vmem>>, vector<1x128xf32>
    %106 = vector.broadcast %105 : vector<1x128xf32> to vector<8x128xf32>
    %107 = arith.addf %104, %106 : vector<8x128xf32>
    %cst_61 = arith.constant 0.000000e+00 : f32
    %108 = vector.broadcast %cst_61 : f32 to vector<8x128xf32>
    %109 = arith.maximumf %107, %108 : vector<8x128xf32>
    %110 = math.absf %107 : vector<8x128xf32>
    %cst_62 = arith.constant 0.000000e+00 : f32
    %111 = vector.broadcast %cst_62 : f32 to vector<8x128xf32>
    %112 = arith.subf %111, %110 : vector<8x128xf32>
    %113 = math.exp %112 : vector<8x128xf32>
    %114 = math.log1p %113 : vector<8x128xf32>
    %115 = arith.addf %109, %114 : vector<8x128xf32>
    %cst_63 = arith.constant 0.693147182 : f32
    %116 = vector.broadcast %cst_63 : f32 to vector<8x128xf32>
    %117 = arith.subf %115, %116 : vector<8x128xf32>
    %c0_64 = arith.constant 0 : index
    %c0_65 = arith.constant 0 : index
    %118 = vector.load %arg9[%c0_64, %c0_65] : memref<8x128xf32, #tpu.memory_space<vmem>>, vector<8x128xf32>
    tpu.vector_store %arg9[%c0_64, %c0_65], %117 {strides = array<i32>} : memref<8x128xf32, #tpu.memory_space<vmem>>, vector<8x128xf32>,
    return
  }
  func.func @transform_0(%arg0: i32) -> (i32, i32) {
    %c0_i32 = arith.constant 0 : i32
    %c0_i32_0 = arith.constant 0 : i32
    return %arg0, %c0_i32 : i32, i32
  }
  func.func @transform_1(%arg0: i32) -> (i32, i32, i32) {
    %c0_i32 = arith.constant 0 : i32
    %c0_i32_0 = arith.constant 0 : i32
    %c0_i32_1 = arith.constant 0 : i32
    %c0_i32_2 = arith.constant 0 : i32
    return %c0_i32, %c0_i32_0, %c0_i32_1 : i32, i32, i32
  }
  func.func @transform_2(%arg0: i32) -> (i32, i32, i32) {
    %c0_i32 = arith.constant 0 : i32
    %c0_i32_0 = arith.constant 0 : i32
    %c0_i32_1 = arith.constant 0 : i32
    %c0_i32_2 = arith.constant 0 : i32
    return %c0_i32, %c0_i32_0, %c0_i32_1 : i32, i32, i32
  }
  func.func @transform_3(%arg0: i32) -> (i32, i32, i32) {
    %c0_i32 = arith.constant 0 : i32
    %c0_i32_0 = arith.constant 0 : i32
    %c0_i32_1 = arith.constant 0 : i32
    %c0_i32_2 = arith.constant 0 : i32
    return %c0_i32, %c0_i32_0, %c0_i32_1 : i32, i32, i32
  }
  func.func @transform_4(%arg0: i32) -> (i32, i32, i32) {
    %c0_i32 = arith.constant 0 : i32
    %c0_i32_0 = arith.constant 0 : i32
    %c0_i32_1 = arith.constant 0 : i32
    %c0_i32_2 = arith.constant 0 : i32
    return %c0_i32, %c0_i32_0, %c0_i32_1 : i32, i32, i32
  }
  func.func @transform_5(%arg0: i32) -> (i32, i32) {
    %c0_i32 = arith.constant 0 : i32
    %c0_i32_0 = arith.constant 0 : i32
    %c0_i32_1 = arith.constant 0 : i32
    return %c0_i32, %c0_i32_0 : i32, i32
  }
  func.func @transform_6(%arg0: i32) -> (i32, i32) {
    %c0_i32 = arith.constant 0 : i32
    %c0_i32_0 = arith.constant 0 : i32
    %c0_i32_1 = arith.constant 0 : i32
    return %c0_i32, %c0_i32_0 : i32, i32
  }
  func.func @transform_7(%arg0: i32) -> (i32, i32) {
    %c0_i32 = arith.constant 0 : i32
    %c0_i32_0 = arith.constant 0 : i32
    return %arg0, %c0_i32 : i32, i32
  }
  func.func @transform_8(%arg0: i32) -> (i32, i32) {
    %c0_i32 = arith.constant 0 : i32
    %c0_i32_0 = arith.constant 0 : i32
    return %arg0, %c0_i32 : i32, i32
  }
}

module attributes {stable_mosaic.version = 11 : i64} {
  func.func @kernel(%arg0: i32, %arg1: memref<8x128xf32, #tpu.memory_space<vmem>>, %arg2: memref<3x128x128xf32, #tpu.memory_space<vmem>>, %arg3: memref<3x1x128xf32, #tpu.memory_space<vmem>>, %arg4: memref<3x128x128xf32, #tpu.memory_space<vmem>>, %arg5: memref<3x1x128xf32, #tpu.memory_space<vmem>>, %arg6: memref<128x128xf32, #tpu.memory_space<vmem>>, %arg7: memref<1x128xf32, #tpu.memory_space<vmem>>, %arg8: memref<8x128xf32, #tpu.memory_space<vmem>>, %arg9: memref<8x128xf32, #tpu.memory_space<vmem>>) attributes {dimension_semantics = [#tpu.dimension_semantics<parallel>], iteration_bounds = array<i64: 2>, scalar_prefetch = 0 : i64, scratch_operands = 0 : i64, tpu.core_type = #tpu.core_type<tc>, window_params = [{transform_indices = @transform_0, window_bounds = array<i64: 8, 128>}, {pipeline_mode = #tpu.pipeline_mode<synchronous>, transform_indices = @transform_1, window_bounds = array<i64: 3, 128, 128>}, {pipeline_mode = #tpu.pipeline_mode<synchronous>, transform_indices = @transform_2, window_bounds = array<i64: 3, 1, 128>}, {pipeline_mode = #tpu.pipeline_mode<synchronous>, transform_indices = @transform_3, window_bounds = array<i64: 3, 128, 128>}, {pipeline_mode = #tpu.pipeline_mode<synchronous>, transform_indices = @transform_4, window_bounds = array<i64: 3, 1, 128>}, {pipeline_mode = #tpu.pipeline_mode<synchronous>, transform_indices = @transform_5, window_bounds = array<i64: 128, 128>}, {pipeline_mode = #tpu.pipeline_mode<synchronous>, transform_indices = @transform_6, window_bounds = array<i64: 1, 128>}, {transform_indices = @transform_7, window_bounds = array<i64: 8, 128>}, {transform_indices = @transform_8, window_bounds = array<i64: 8, 128>}]} {
    %c0 = arith.constant 0 : index
    %c0_0 = arith.constant 0 : index
    %0 = vector.load %arg1[%c0, %c0_0] : memref<8x128xf32, #tpu.memory_space<vmem>>, vector<8x128xf32>
    %cst = arith.constant 0.000000e+00 : f32
    %1 = vector.broadcast %cst : f32 to vector<8x128xf32>
    %2 = arith.maximumf %0, %1 : vector<8x128xf32>
    %3 = math.absf %0 : vector<8x128xf32>
    %cst_1 = arith.constant 0.000000e+00 : f32
    %4 = vector.broadcast %cst_1 : f32 to vector<8x128xf32>
    %5 = arith.subf %4, %3 : vector<8x128xf32>
    %6 = math.exp %5 : vector<8x128xf32>
    %7 = math.log1p %6 : vector<8x128xf32>
    %8 = arith.addf %2, %7 : vector<8x128xf32>
    %c0_2 = arith.constant 0 : index
    %c0_3 = arith.constant 0 : index
    %c0_4 = arith.constant 0 : index
    %9 = vector.load %arg2[%c0_2, %c0_3, %c0_4] : memref<3x128x128xf32, #tpu.memory_space<vmem>>, vector<1x128x128xf32>
    %10 = vector.shape_cast %9 : vector<1x128x128xf32> to vector<128x128xf32>
    %cst_5 = arith.constant dense<0.000000e+00> : vector<8x128xf32>
    %11 = tpu.matmul %8, %10, %cst_5 {dimension_numbers = #tpu.dot_dimension_numbers<[1], [0], [0], [1], [0, 0, 1, 1], [], []>} : vector<8x128xf32>, vector<128x128xf32>, vector<8x128xf32> -> vector<8x128xf32>
    %c0_6 = arith.constant 0 : index
    %c0_7 = arith.constant 0 : index
    %c0_8 = arith.constant 0 : index
    %12 = vector.load %arg3[%c0_6, %c0_7, %c0_8] : memref<3x1x128xf32, #tpu.memory_space<vmem>>, vector<1x1x128xf32>
    %13 = vector.shape_cast %12 : vector<1x1x128xf32> to vector<1x128xf32>
    %14 = vector.broadcast %13 : vector<1x128xf32> to vector<8x128xf32>
    %15 = arith.addf %11, %14 : vector<8x128xf32>
    %cst_9 = arith.constant 0.000000e+00 : f32
    %16 = vector.broadcast %cst_9 : f32 to vector<8x128xf32>
    %17 = arith.maximumf %15, %16 : vector<8x128xf32>
    %18 = math.absf %15 : vector<8x128xf32>
    %cst_10 = arith.constant 0.000000e+00 : f32
    %19 = vector.broadcast %cst_10 : f32 to vector<8x128xf32>
    %20 = arith.subf %19, %18 : vector<8x128xf32>
    %21 = math.exp %20 : vector<8x128xf32>
    %22 = math.log1p %21 : vector<8x128xf32>
    %23 = arith.addf %17, %22 : vector<8x128xf32>
    %c0_11 = arith.constant 0 : index
    %c0_12 = arith.constant 0 : index
    %c0_13 = arith.constant 0 : index
    %24 = vector.load %arg4[%c0_11, %c0_12, %c0_13] : memref<3x128x128xf32, #tpu.memory_space<vmem>>, vector<1x128x128xf32>
    %25 = vector.shape_cast %24 : vector<1x128x128xf32> to vector<128x128xf32>
    %cst_14 = arith.constant dense<0.000000e+00> : vector<8x128xf32>
    %26 = tpu.matmul %23, %25, %cst_14 {dimension_numbers = #tpu.dot_dimension_numbers<[1], [0], [0], [1], [0, 0, 1, 1], [], []>} : vector<8x128xf32>, vector<128x128xf32>, vector<8x128xf32> -> vector<8x128xf32>
    %c0_15 = arith.constant 0 : index
    %c0_16 = arith.constant 0 : index
    %c0_17 = arith.constant 0 : index
    %27 = vector.load %arg5[%c0_15, %c0_16, %c0_17] : memref<3x1x128xf32, #tpu.memory_space<vmem>>, vector<1x1x128xf32>
    %28 = vector.shape_cast %27 : vector<1x1x128xf32> to vector<1x128xf32>
    %29 = vector.broadcast %28 : vector<1x128xf32> to vector<8x128xf32>
    %30 = arith.addf %26, %29 : vector<8x128xf32>
    %31 = arith.addf %0, %30 : vector<8x128xf32>
    %cst_18 = arith.constant 0.000000e+00 : f32
    %32 = vector.broadcast %cst_18 : f32 to vector<8x128xf32>
    %33 = arith.maximumf %31, %32 : vector<8x128xf32>
    %34 = math.absf %31 : vector<8x128xf32>
    %cst_19 = arith.constant 0.000000e+00 : f32
    %35 = vector.broadcast %cst_19 : f32 to vector<8x128xf32>
    %36 = arith.subf %35, %34 : vector<8x128xf32>
    %37 = math.exp %36 : vector<8x128xf32>
    %38 = math.log1p %37 : vector<8x128xf32>
    %39 = arith.addf %33, %38 : vector<8x128xf32>
    %c1 = arith.constant 1 : index
    %c0_20 = arith.constant 0 : index
    %c0_21 = arith.constant 0 : index
    %40 = vector.load %arg2[%c1, %c0_20, %c0_21] : memref<3x128x128xf32, #tpu.memory_space<vmem>>, vector<1x128x128xf32>
    %41 = vector.shape_cast %40 : vector<1x128x128xf32> to vector<128x128xf32>
    %cst_22 = arith.constant dense<0.000000e+00> : vector<8x128xf32>
    %42 = tpu.matmul %39, %41, %cst_22 {dimension_numbers = #tpu.dot_dimension_numbers<[1], [0], [0], [1], [0, 0, 1, 1], [], []>} : vector<8x128xf32>, vector<128x128xf32>, vector<8x128xf32> -> vector<8x128xf32>
    %c1_23 = arith.constant 1 : index
    %c0_24 = arith.constant 0 : index
    %c0_25 = arith.constant 0 : index
    %43 = vector.load %arg3[%c1_23, %c0_24, %c0_25] : memref<3x1x128xf32, #tpu.memory_space<vmem>>, vector<1x1x128xf32>
    %44 = vector.shape_cast %43 : vector<1x1x128xf32> to vector<1x128xf32>
    %45 = vector.broadcast %44 : vector<1x128xf32> to vector<8x128xf32>
    %46 = arith.addf %42, %45 : vector<8x128xf32>
    %cst_26 = arith.constant 0.000000e+00 : f32
    %47 = vector.broadcast %cst_26 : f32 to vector<8x128xf32>
    %48 = arith.maximumf %46, %47 : vector<8x128xf32>
    %49 = math.absf %46 : vector<8x128xf32>
    %cst_27 = arith.constant 0.000000e+00 : f32
    %50 = vector.broadcast %cst_27 : f32 to vector<8x128xf32>
    %51 = arith.subf %50, %49 : vector<8x128xf32>
    %52 = math.exp %51 : vector<8x128xf32>
    %53 = math.log1p %52 : vector<8x128xf32>
    %54 = arith.addf %48, %53 : vector<8x128xf32>
    %c1_28 = arith.constant 1 : index
    %c0_29 = arith.constant 0 : index
    %c0_30 = arith.constant 0 : index
    %55 = vector.load %arg4[%c1_28, %c0_29, %c0_30] : memref<3x128x128xf32, #tpu.memory_space<vmem>>, vector<1x128x128xf32>
    %56 = vector.shape_cast %55 : vector<1x128x128xf32> to vector<128x128xf32>
    %cst_31 = arith.constant dense<0.000000e+00> : vector<8x128xf32>
    %57 = tpu.matmul %54, %56, %cst_31 {dimension_numbers = #tpu.dot_dimension_numbers<[1], [0], [0], [1], [0, 0, 1, 1], [], []>} : vector<8x128xf32>, vector<128x128xf32>, vector<8x128xf32> -> vector<8x128xf32>
    %c1_32 = arith.constant 1 : index
    %c0_33 = arith.constant 0 : index
    %c0_34 = arith.constant 0 : index
    %58 = vector.load %arg5[%c1_32, %c0_33, %c0_34] : memref<3x1x128xf32, #tpu.memory_space<vmem>>, vector<1x1x128xf32>
    %59 = vector.shape_cast %58 : vector<1x1x128xf32> to vector<1x128xf32>
    %60 = vector.broadcast %59 : vector<1x128xf32> to vector<8x128xf32>
    %61 = arith.addf %57, %60 : vector<8x128xf32>
    %62 = arith.addf %31, %61 : vector<8x128xf32>
    %c0_35 = arith.constant 0 : index
    %c0_36 = arith.constant 0 : index
    %63 = vector.load %arg8[%c0_35, %c0_36] : memref<8x128xf32, #tpu.memory_space<vmem>>, vector<8x128xf32>
    tpu.vector_store %arg8[%c0_35, %c0_36], %62 {strides = array<i32>} : memref<8x128xf32, #tpu.memory_space<vmem>>, vector<8x128xf32>,
    %cst_37 = arith.constant 0.000000e+00 : f32
    %64 = vector.broadcast %cst_37 : f32 to vector<8x128xf32>
    %65 = arith.maximumf %62, %64 : vector<8x128xf32>
    %66 = math.absf %62 : vector<8x128xf32>
    %cst_38 = arith.constant 0.000000e+00 : f32
    %67 = vector.broadcast %cst_38 : f32 to vector<8x128xf32>
    %68 = arith.subf %67, %66 : vector<8x128xf32>
    %69 = math.exp %68 : vector<8x128xf32>
    %70 = math.log1p %69 : vector<8x128xf32>
    %71 = arith.addf %65, %70 : vector<8x128xf32>
    %c2 = arith.constant 2 : index
    %c0_39 = arith.constant 0 : index
    %c0_40 = arith.constant 0 : index
    %72 = vector.load %arg2[%c2, %c0_39, %c0_40] : memref<3x128x128xf32, #tpu.memory_space<vmem>>, vector<1x128x128xf32>
    %73 = vector.shape_cast %72 : vector<1x128x128xf32> to vector<128x128xf32>
    %cst_41 = arith.constant dense<0.000000e+00> : vector<8x128xf32>
    %74 = tpu.matmul %71, %73, %cst_41 {dimension_numbers = #tpu.dot_dimension_numbers<[1], [0], [0], [1], [0, 0, 1, 1], [], []>} : vector<8x128xf32>, vector<128x128xf32>, vector<8x128xf32> -> vector<8x128xf32>
    %c2_42 = arith.constant 2 : index
    %c0_43 = arith.constant 0 : index
    %c0_44 = arith.constant 0 : index
    %75 = vector.load %arg3[%c2_42, %c0_43, %c0_44] : memref<3x1x128xf32, #tpu.memory_space<vmem>>, vector<1x1x128xf32>
    %76 = vector.shape_cast %75 : vector<1x1x128xf32> to vector<1x128xf32>
    %77 = vector.broadcast %76 : vector<1x128xf32> to vector<8x128xf32>
    %78 = arith.addf %74, %77 : vector<8x128xf32>
    %cst_45 = arith.constant 0.000000e+00 : f32
    %79 = vector.broadcast %cst_45 : f32 to vector<8x128xf32>
    %80 = arith.maximumf %78, %79 : vector<8x128xf32>
    %81 = math.absf %78 : vector<8x128xf32>
    %cst_46 = arith.constant 0.000000e+00 : f32
    %82 = vector.broadcast %cst_46 : f32 to vector<8x128xf32>
    %83 = arith.subf %82, %81 : vector<8x128xf32>
    %84 = math.exp %83 : vector<8x128xf32>
    %85 = math.log1p %84 : vector<8x128xf32>
    %86 = arith.addf %80, %85 : vector<8x128xf32>
    %c2_47 = arith.constant 2 : index
    %c0_48 = arith.constant 0 : index
    %c0_49 = arith.constant 0 : index
    %87 = vector.load %arg4[%c2_47, %c0_48, %c0_49] : memref<3x128x128xf32, #tpu.memory_space<vmem>>, vector<1x128x128xf32>
    %88 = vector.shape_cast %87 : vector<1x128x128xf32> to vector<128x128xf32>
    %cst_50 = arith.constant dense<0.000000e+00> : vector<8x128xf32>
    %89 = tpu.matmul %86, %88, %cst_50 {dimension_numbers = #tpu.dot_dimension_numbers<[1], [0], [0], [1], [0, 0, 1, 1], [], []>} : vector<8x128xf32>, vector<128x128xf32>, vector<8x128xf32> -> vector<8x128xf32>
    %c2_51 = arith.constant 2 : index
    %c0_52 = arith.constant 0 : index
    %c0_53 = arith.constant 0 : index
    %90 = vector.load %arg5[%c2_51, %c0_52, %c0_53] : memref<3x1x128xf32, #tpu.memory_space<vmem>>, vector<1x1x128xf32>
    %91 = vector.shape_cast %90 : vector<1x1x128xf32> to vector<1x128xf32>
    %92 = vector.broadcast %91 : vector<1x128xf32> to vector<8x128xf32>
    %93 = arith.addf %89, %92 : vector<8x128xf32>
    %94 = arith.addf %62, %93 : vector<8x128xf32>
    %cst_54 = arith.constant 0.000000e+00 : f32
    %95 = vector.broadcast %cst_54 : f32 to vector<8x128xf32>
    %96 = arith.maximumf %94, %95 : vector<8x128xf32>
    %97 = math.absf %94 : vector<8x128xf32>
    %cst_55 = arith.constant 0.000000e+00 : f32
    %98 = vector.broadcast %cst_55 : f32 to vector<8x128xf32>
    %99 = arith.subf %98, %97 : vector<8x128xf32>
    %100 = math.exp %99 : vector<8x128xf32>
    %101 = math.log1p %100 : vector<8x128xf32>
    %102 = arith.addf %96, %101 : vector<8x128xf32>
    %c0_56 = arith.constant 0 : index
    %c0_57 = arith.constant 0 : index
    %103 = vector.load %arg6[%c0_56, %c0_57] : memref<128x128xf32, #tpu.memory_space<vmem>>, vector<128x128xf32>
    %cst_58 = arith.constant dense<0.000000e+00> : vector<8x128xf32>
    %104 = tpu.matmul %102, %103, %cst_58 {dimension_numbers = #tpu.dot_dimension_numbers<[1], [0], [0], [1], [0, 0, 1, 1], [], []>} : vector<8x128xf32>, vector<128x128xf32>, vector<8x128xf32> -> vector<8x128xf32>
    %c0_59 = arith.constant 0 : index
    %c0_60 = arith.constant 0 : index
    %105 = vector.load %arg7[%c0_59, %c0_60] : memref<1x128xf32, #tpu.memory_space<vmem>>, vector<1x128xf32>
    %106 = vector.broadcast %105 : vector<1x128xf32> to vector<8x128xf32>
    %107 = arith.addf %104, %106 : vector<8x128xf32>
    %cst_61 = arith.constant 0.000000e+00 : f32
    %108 = vector.broadcast %cst_61 : f32 to vector<8x128xf32>
    %109 = arith.maximumf %107, %108 : vector<8x128xf32>
    %110 = math.absf %107 : vector<8x128xf32>
    %cst_62 = arith.constant 0.000000e+00 : f32
    %111 = vector.broadcast %cst_62 : f32 to vector<8x128xf32>
    %112 = arith.subf %111, %110 : vector<8x128xf32>
    %113 = math.exp %112 : vector<8x128xf32>
    %114 = math.log1p %113 : vector<8x128xf32>
    %115 = arith.addf %109, %114 : vector<8x128xf32>
    %cst_63 = arith.constant 0.693147182 : f32
    %116 = vector.broadcast %cst_63 : f32 to vector<8x128xf32>
    %117 = arith.subf %115, %116 : vector<8x128xf32>
    %c0_64 = arith.constant 0 : index
    %c0_65 = arith.constant 0 : index
    %118 = vector.load %arg9[%c0_64, %c0_65] : memref<8x128xf32, #tpu.memory_space<vmem>>, vector<8x128xf32>
    tpu.vector_store %arg9[%c0_64, %c0_65], %117 {strides = array<i32>} : memref<8x128xf32, #tpu.memory_space<vmem>>, vector<8x128xf32>,
    return
  }
  func.func @transform_0(%arg0: i32) -> (i32, i32) {
    %c0_i32 = arith.constant 0 : i32
    %c0_i32_0 = arith.constant 0 : i32
    return %arg0, %c0_i32 : i32, i32
  }
  func.func @transform_1(%arg0: i32) -> (i32, i32, i32) {
    %c0_i32 = arith.constant 0 : i32
    %c0_i32_0 = arith.constant 0 : i32
    %c0_i32_1 = arith.constant 0 : i32
    %c0_i32_2 = arith.constant 0 : i32
    return %c0_i32, %c0_i32_0, %c0_i32_1 : i32, i32, i32
  }
  func.func @transform_2(%arg0: i32) -> (i32, i32, i32) {
    %c0_i32 = arith.constant 0 : i32
    %c0_i32_0 = arith.constant 0 : i32
    %c0_i32_1 = arith.constant 0 : i32
    %c0_i32_2 = arith.constant 0 : i32
    return %c0_i32, %c0_i32_0, %c0_i32_1 : i32, i32, i32
  }
  func.func @transform_3(%arg0: i32) -> (i32, i32, i32) {
    %c0_i32 = arith.constant 0 : i32
    %c0_i32_0 = arith.constant 0 : i32
    %c0_i32_1 = arith.constant 0 : i32
    %c0_i32_2 = arith.constant 0 : i32
    return %c0_i32, %c0_i32_0, %c0_i32_1 : i32, i32, i32
  }
  func.func @transform_4(%arg0: i32) -> (i32, i32, i32) {
    %c0_i32 = arith.constant 0 : i32
    %c0_i32_0 = arith.constant 0 : i32
    %c0_i32_1 = arith.constant 0 : i32
    %c0_i32_2 = arith.constant 0 : i32
    return %c0_i32, %c0_i32_0, %c0_i32_1 : i32, i32, i32
  }
  func.func @transform_5(%arg0: i32) -> (i32, i32) {
    %c0_i32 = arith.constant 0 : i32
    %c0_i32_0 = arith.constant 0 : i32
    %c0_i32_1 = arith.constant 0 : i32
    return %c0_i32, %c0_i32_0 : i32, i32
  }
  func.func @transform_6(%arg0: i32) -> (i32, i32) {
    %c0_i32 = arith.constant 0 : i32
    %c0_i32_0 = arith.constant 0 : i32
    %c0_i32_1 = arith.constant 0 : i32
    return %c0_i32, %c0_i32_0 : i32, i32
  }
  func.func @transform_7(%arg0: i32) -> (i32, i32) {
    %c0_i32 = arith.constant 0 : i32
    %c0_i32_0 = arith.constant 0 : i32
    return %arg0, %c0_i32 : i32, i32
  }
  func.func @transform_8(%arg0: i32) -> (i32, i32) {
    %c0_i32 = arith.constant 0 : i32
    %c0_i32_0 = arith.constant 0 : i32
    return %arg0, %c0_i32 : i32, i32
  }
}

</mosaic_0001>

<bundles_post_ra>
// kernel: tpu_custom_call.1
= control target key start
LH: loop header
LB: loop body
LE: loop exit
PB: predicated region body
PF: predicated region fallthrough
CT: control target
= control target key end

     0   :  { %14 = vsyncpa [#allocation3], 0  ;;  %s2693_s0 = inlined_call_operand.hbm [shape: f32[16,128], index: 0, kind: input, shape index: {}]   ;;  %s2694_s1 = inlined_call_operand.hbm [shape: f32[3,128,128], index: 1, kind: input, shape index: {}]   ;;  %s2695_s2 = inlined_call_operand.vmem [shape: f32[3,1,128], index: 2, kind: input, shape index: {}]   ;;  %s2696_s3 = inlined_call_operand.hbm [shape: f32[3,128,128], index: 3, kind: input, shape index: {}]   ;;  %s2697_s4 = inlined_call_operand.vmem [shape: f32[3,1,128], index: 4, kind: input, shape index: {}]   ;;  %s2698_s5 = inlined_call_operand.hbm [shape: f32[128,128], index: 5, kind: input, shape index: {}]   ;;  %s2699_s6 = inlined_call_operand.vmem [shape: f32[1,128], index: 6, kind: input, shape index: {}]   ;;  %s2700_s7 = inlined_call_operand.hbm [shape: f32[16,128], index: 7, kind: output, shape index: {0}]   ;;  %s2701_s8 = inlined_call_operand.hbm [shape: f32[16,128], index: 8, kind: output, shape index: {1}]  }
   0x1   :  { %16 = vsyncpa [#allocation3 + $0x1], 0 }
   0x2   :  { %17 = vsyncpa [#allocation6], 0 }
   0x3   :  { %18 = vsyncpa [#allocation9], 0 }
   0x4   :  { %19 = vsyncpa [#allocation4], 0 }
   0x5   :  { %21 = vsyncpa [#allocation4 + $0x1], 0 }
   0x6   :  { %22 = vsyncpa [#allocation12], 0 }
   0x7   :  { %24 = vsyncpa [#allocation12 + $0x1], 0  ;;  %s2287_s27 = smov 0   ;;  %s2289_s28 = smov 0  }
   0x8   :  { %s2291_s29 = smov 0   ;;  %s2293_s30 = smov 0  }
   0x9 LB: > { %2707 = sst [smem:[#allocation18_spill]] %s2217_s27  ;;  %s2308_s9 = sadd.s32 4294967295, %s2229_s30   ;;  %s2229_s30 = sphi %s2293_s30, %s2730_s30   ;;  %s2225_s29 = sphi %s2291_s29, %s2729_s29   ;;  %s2221_s28 = sphi %s2289_s28, %s2728_s28   ;;  %s2217_s27 = sphi %s2287_s27, %s2727_s27  }
   0xa   : > { %s1325_s10 = sadd.s32 4294967294, %s2229_s30   ;;  %p50_p0 = scmp.ne.s32.totalorder %s2221_s28, %s2217_s27 }
   0xb   : > { %p2702_p1 = scmp.eq.s32.totalorder %s2308_s9, 0  ;;  %p206_p3 = scmp.eq.s32.totalorder %s1325_s10, 1 }
   0xc   : > { %p1326_p5 = scmp.ge.s32.totalorder %s2229_s30, 1  ;;  %p239_p7 = scmp.lt.s32.totalorder %s2229_s30, 3 }
   0xd   : > { %p2317_p4 = por %p2702_p1, %p50_p0  ;;  %p2322_p6 = por %p206_p3, %p50_p0 }
   0xe   : > { %p2327_p8 = pnand %p1326_p5, %p239_p7  ;;  %s2231_s14 = smov [#allocation5]  }
   0xf   : > { %s2708_s11 = scalar_select %p2317_p4, 1, 0 }
  0x10   : > { %s2709_s12 = scalar_select %p2322_p6, 1, 0 }
  0x11   : > { %s2711_s13 = scalar_select %p2327_p8, 1, 0 }
  0x12   : > { %2710 = sst [smem:[#allocation19_spill]] %s2709_s12  ;;  %s251_s15 = sshll.u32 %s2231_s14, 4  ;;  %s2331_s15 = int_to_ptr.vmem [resolvable:$true] %s251_s15 }
  0x13   : > { %p1908_p9 = pneg %p2327_p8  ;;  %s2232_s17 = smov [#allocation7]  }
  0x14   : > { %s267_s18 = sshll.u32 %s2232_s17, 4  ;;  %s2233_s19 = smov [#allocation8]   ;;  %s2342_s18 = int_to_ptr.vmem [resolvable:$true] %s267_s18 }
  0x15   : > { %p2338_p11 = pnand %p1908_p9, %p2702_p1  ;;  %s2344_s20 = sshll.u32 %s2233_s19, 4  ;;  %s284_s20 = int_to_ptr.vmem [resolvable:$true] %s2344_s20 }
  0x16   : > { %s2009_s23 = scalar_lea.hbm %s2694_s1, 6144 }
  0x17   : > { %p2010_p12 = scmp.ne.s32.totalorder %s2694_s1, %s2009_s23  ;;  %p2354_p13 = pneg %p2338_p11 }
  0x18   : > { %p2016_p5 = scmp.lt.u32.totalorder %s2009_s23, %s2694_s1 }
  0x19   : > { %p2012_p0 = pnand %p2354_p13, %p2010_p12 }
  0x1b   : > { %p2013_p3 = pneg %p2012_p0 }
  0x1d   : > { %p2018_p7 = pnand %p2016_p5, %p2013_p3 }
  0x1f   : > { %2021 = shalt.err (!%p2018_p7)
}
  0x20   : > { %s2022_s17 = scalar_lea.vmem %s2331_s15, 6144  ;;  %p2030_p2 = scmp.lt.s32.totalorder %s2331_s15, %s2331_s15 }
  0x21   : > { %p2023_p9 = scmp.ne.s32.totalorder %s2331_s15, %s2022_s17  ;;  %p2031_p6 = scmp.lt.s32.totalorder %s2022_s17, %s2022_s17 }
  0x23   : > { %p2025_p10 = pnand %p2023_p9, %p2354_p13  ;;  %p2032_p12 = por %p2031_p6, %p2030_p2 }
  0x25   : > { %p2026_p1 = pneg %p2025_p10 }
  0x27   : > { %p2033_p0 = pnand %p2032_p12, %p2026_p1 }
  0x29   : > { %2036 = shalt.err (!%p2033_p0)
}
  0x2a   : > { %s2234_s19 = smov 128   ;;  %s2235_s21 = smov 8  }
  0x2b   : > { %1911 = dma.hbm_to_vmem [thread:$0]  (!%p2338_p11), %s2694_s1, 6144, %s2331_s15, [#allocation6], %s2234_s19, %s2234_s19, %s2235_s21  }
  0x2c   : > { %s2037_s10 = scalar_lea.hbm %s2696_s3, 6144 }
  0x2d   : > { %p2038_p1 = scmp.ne.s32.totalorder %s2696_s3, %s2037_s10  ;;  %p2044_p10 = scmp.lt.u32.totalorder %s2037_s10, %s2696_s3 }
  0x2f   : > { %p2040_p2 = pnand %p2038_p1, %p2354_p13 }
  0x31   : > { %p2041_p6 = pneg %p2040_p2 }
  0x33   : > { %p2046_p3 = pnand %p2044_p10, %p2041_p6 }
  0x35   : > { %2049 = shalt.err (!%p2046_p3)
}
  0x36   : > { %s2050_s15 = scalar_lea.vmem %s2342_s18, 6144  ;;  %p2058_p12 = scmp.lt.s32.totalorder %s2342_s18, %s2342_s18 }
  0x37   : > { %p2051_p5 = scmp.ne.s32.totalorder %s2342_s18, %s2050_s15  ;;  %p2059_p0 = scmp.lt.s32.totalorder %s2050_s15, %s2050_s15 }
  0x39   : > { %p2053_p7 = pnand %p2051_p5, %p2354_p13  ;;  %p2060_p1 = por %p2059_p0, %p2058_p12 }
  0x3b   : > { %p2054_p9 = pneg %p2053_p7 }
  0x3d   : > { %p2061_p2 = pnand %p2060_p1, %p2054_p9 }
  0x3f   : > { %2064 = shalt.err (!%p2061_p2)
}
  0x40   : > { %1914 = dma.hbm_to_vmem [thread:$0]  (!%p2338_p11), %s2696_s3, 6144, %s2342_s18, [#allocation6], %s2234_s19, %s2234_s19, %s2235_s21  }
  0x41   : > { %s2065_s24 = scalar_lea.hbm %s2698_s5, 2048 }
  0x42   : > { %p2066_p6 = scmp.ne.s32.totalorder %s2698_s5, %s2065_s24  ;;  %p2072_p5 = scmp.lt.u32.totalorder %s2065_s24, %s2698_s5 }
  0x44   : > { %p2068_p10 = pnand %p2066_p6, %p2354_p13 }
  0x46   : > { %p2069_p3 = pneg %p2068_p10 }
  0x48   : > { %p2074_p7 = pnand %p2072_p5, %p2069_p3 }
  0x4a   : > { %2077 = shalt.err (!%p2074_p7)
}
  0x4b   : > { %s2078_s15 = scalar_lea.vmem %s284_s20, 2048  ;;  %p2086_p1 = scmp.lt.s32.totalorder %s284_s20, %s284_s20 }
  0x4c   : > { %p2079_p9 = scmp.ne.s32.totalorder %s284_s20, %s2078_s15  ;;  %p2087_p2 = scmp.lt.s32.totalorder %s2078_s15, %s2078_s15 }
  0x4e   : > { %p2081_p12 = pnand %p2079_p9, %p2354_p13  ;;  %p2088_p4 = por %p2087_p2, %p2086_p1 }
  0x50   : > { %p2082_p0 = pneg %p2081_p12 }
  0x52   : > { %p2089_p8 = pnand %p2088_p4, %p2082_p0 }
  0x54   : > { %2092 = shalt.err (!%p2089_p8)
}
  0x55   : > { %1917 = dma.hbm_to_vmem [thread:$0]  (!%p2338_p11), %s2698_s5, 2048, %s284_s20, [#allocation9], %s2234_s19, %s2234_s19, %s2235_s21  }
  0x56   : > { %s2427_s26 = sadd.s32 1, %s2229_s30   ;;  %s37_s12 = sadd.s32 1, %s2225_s29 }
  0x57   : > { %s34_s16 = ssub.s32 %s2229_s30, %s2427_s26  ;;  %p44_p8 = scmp.ne.s32.totalorder %s2225_s29, %s2221_s28 }
  0x58   : > { %p35_p4 = scmp.eq.s32.totalorder %s34_s16, 0  ;;  %p45_p13 = scmp.eq.s32.totalorder %s2229_s30, 0 }
  0x59   : > { %p1932_p6 = scmp.lt.s32.totalorder %s2229_s30, 2  ;;  %p2714_p3 = scmp.eq.s32.totalorder %s2308_s9, 1 }
  0x5a   : > { %s2437_s22 = scalar_select %p35_p4, %s2225_s29, %s37_s12  }
  0x5b   : > { %p46_p10 = por %p45_p13, %p44_p8  ;;  %p2441_p5 = por %p2714_p3, %p44_p8 }
  0x5c   : > { %s300_s24 = sand.u32 1, %s2225_s29   ;;  %s1332_s25 = sshll.u32 %s2229_s30, 7 }
  0x5d   : > { %s1331_s20 = sshll.u32 %s300_s24, 3  ;;  %s2450_s10 = scalar_lea.hbm %s2693_s0, %s1332_s25 }
  0x5e   : > { %s304_s14 = scalar_lea.vmem [#allocation2], %s1331_s20  ;;  %p2452_p11 = pnand %p1932_p6, %p46_p10 }
  0x5f   : > { %s311_s17 = sshll.u32 %s304_s14, 4  ;;  %s301_s18 = scalar_lea.sflag [#allocation3], %s300_s24  ;;  %s2456_s17 = int_to_ptr.vmem [resolvable:$true] %s311_s17 }
  0x60   : > { %s2093_s27 = scalar_lea.hbm %s2450_s10, 128  ;;  %p2095_p9 = pneg %p2452_p11 }
  0x61   : > { %p2094_p7 = scmp.ne.s32.totalorder %s2450_s10, %s2093_s27  ;;  %s2098_s25 = scalar_lea.hbm %s2693_s0, 256 }
  0x62   : > { %p2099_p1 = scmp.lt.u32.totalorder %s2450_s10, %s2693_s0  ;;  %p2100_p2 = scmp.lt.u32.totalorder %s2098_s25, %s2093_s27 }
  0x63   : > { %p2096_p12 = pnand %p2095_p9, %p2094_p7  ;;  %p2102_p8 = scmp.lt.u32.totalorder %s2093_s27, %s2450_s10 }
  0x64   : > { %p2101_p4 = por %p2100_p2, %p2099_p1 }
  0x65   : > { %p2097_p0 = pneg %p2096_p12 }
  0x66   : > { %p2103_p13 = por %p2102_p8, %p2101_p4 }
  0x68   : > { %p2104_p6 = pnand %p2103_p13, %p2097_p0 }
  0x6a   : > { %2107 = shalt.err (!%p2104_p6)
}
  0x6b   : > { %s2108_s24 = scalar_lea.vmem %s2456_s17, 128  ;;  %s2236_s21 = smov [#allocation2]  }
  0x6c   : > { %p2109_p10 = scmp.ne.s32.totalorder %s2456_s17, %s2108_s24  ;;  %s2113_s14 = sshll.u32 %s2236_s21, 4  ;;  %s2114_s14 = int_to_ptr.vmem [resolvable:$false] %s2113_s14 }
  0x6d   : > { %s2115_s16 = scalar_lea.vmem %s2114_s14, 256  ;;  %p2116_p12 = scmp.lt.s32.totalorder %s2456_s17, %s2114_s14 }
  0x6e   : > { %p2111_p3 = pnand %p2109_p10, %p2095_p9  ;;  %p2117_p1 = scmp.lt.s32.totalorder %s2115_s16, %s2108_s24 }
  0x70   : > { %p2112_p7 = pneg %p2111_p3  ;;  %p2118_p2 = por %p2117_p1, %p2116_p12 }
  0x72   : > { %p2119_p4 = pnand %p2118_p2, %p2112_p7 }
  0x74   : > { %2122 = shalt.err (!%p2119_p4)
}
  0x75   : > { %1921 = dma.hbm_to_vmem [thread:$0]  (!%p2452_p11), %s2450_s10, 128, %s2456_s17, %s301_s18  }
  0x76   : > { %p2717_p0 = scmp.ne.s32.totalorder %s2711_s13, 0 }
  0x77   : > { %s2486_s27 = sand.u32 (!%p2717_p0), 1, %s2221_s28   ;;  %p2718_p9 = scmp.ne.s32.totalorder (!%p2717_p0), %s2708_s11, 0 }
  0x78   : > { %320 = sbr.rel (%p2717_p0) target bundleno = 1938 (0x792), region = 48  ;;  %s2489_s12 = sshll.u32 (!%p2717_p0), %s2486_s27, 3 }
  0x79   : > { %s323_s25 = scalar_lea.sflag (!%p2717_p0), [#allocation3], %s2486_s27  ;;  %s326_s20 = scalar_lea.vmem (!%p2717_p0), [#allocation2], %s2489_s12 }
  0x7f   : > { %2196 = dma.done.wait (%p2718_p9), %s323_s25, 128  }
  0x80   : > { %2198 = vsyncadd (%p2718_p9), %s323_s25, 4294967168  ;;  %p2719_p11 = scmp.eq.s32.totalorder %s2308_s9, 0 }
  0x82   : > { %2200 = dma.done.wait (%p2719_p11), [#allocation6], 12288   ;;  %p2720_p8 = pmov %p2719_p11 }
  0x84   : > { %2202 = vsyncadd (%p2720_p8), [#allocation6], 4294955008  ;;  %p2721_p13 = pmov %p2720_p8 }
  0x85   : > { %p2722_p6 = pmov %p2720_p8 }
  0x86   : > { %2204 = dma.done.wait (%p2721_p13), [#allocation9], 2048  }
  0x87   : > { %2206 = vsyncadd (%p2722_p6), [#allocation9], 4294965248  ;;  %v2237_v0 = vmov 0.0|0.0   ;;  %vm2238_vm0 = vmmov 0   ;;  %v2239_v1 = vmov 0.0   ;;  %v392_v2 = vld [vmem:[#allocation5] sm:$0xff] }
  0x88   : > { %1722 = vmatprep.subr.bf16.mxu0 %v2237_v0  ;;  %1509 = vmatprep.mubr.msk.f32.mxu0 %vm2238_vm0, %v2239_v1  ;;  %v393_v3 = vld [vmem:[#allocation5 + $0x8] sm:$0xff]  ;;  %v394_v4 = vld [vmem:[#allocation5 + $0x10] sm:$0xff]  ;;  %v395_v6 = vld [vmem:[#allocation5 + $0x18] sm:$0xff]  ;;  %s368_s21 = scalar_lea.vmem [#allocation10], %s2489_s12  ;;  %s1354_s11 = sshll.u32 %s2308_s9, 7 }
  0x89   : > { %1746 = vmatprep.subr.bf16.mxu1 %v2237_v0  ;;  %1544 = vmatprep.mubr.msk.f32.mxu1 %vm2238_vm0, %v2239_v1  ;;  %v1723_v5 = vpack.c.bf16 %v393_v3, %v392_v2  ;;  %v1726_v7 = vpack.c.bf16 %v395_v6, %v394_v4  ;;  %v396_v8 = vld [vmem:[#allocation5 + $0x20] sm:$0xff]  ;;  %v397_v9 = vld [vmem:[#allocation5 + $0x28] sm:$0xff]  ;;  %v2512_v10 = vld [vmem:[%s326_s20] sm:$0xff]  ;;  %s2618_s17 = scalar_lea.hbm %s2700_s7, %s1354_s11  ;;  %s1181_s15 = sshll.u32 %s368_s21, 4  ;;  %s1182_s15 = int_to_ptr.vmem [resolvable:$true] %s1181_s15 }
  0x8a   : > { %v378_v11 = vand.u32 2147483647, %v2512_v10  ;;  %v1729_v12 = vpack.c.bf16 %v397_v9, %v396_v8  ;;  %v398_v13 = vld [vmem:[#allocation5 + $0x30] sm:$0xff]  ;;  %v399_v14 = vld [vmem:[#allocation5 + $0x38] sm:$0xff]  ;;  %v400_v18 = vld [vmem:[#allocation5 + $0x40] sm:$0xff]  ;;  %v377_v37 = vmax.f32 %v2512_v10, 0.0 }
  0x8b   : > { %1724 = vmatpush3.bf16.msra.mxu0 %v1723_v5  ;;  %v1732_v17 = vpack.c.bf16 %v399_v14, %v398_v13  ;;  %v401_v19 = vld [vmem:[#allocation5 + $0x48] sm:$0xff]  ;;  %v402_v21 = vld [vmem:[#allocation5 + $0x50] sm:$0xff]  ;;  %v403_v22 = vld [vmem:[#allocation5 + $0x58] sm:$0xff]  ;;  %s1163_s18 = scalar_lea.sflag [#allocation4], %s2486_s27  ;;  %s2123_s19 = scalar_lea.vmem %s1182_s15, 128 }
  0x8c   : > { %1725 = vmatprep.subr.bf16.mxu0 %v2237_v0  ;;  %v379_v15 = vsub.f32 0.0, %v378_v11  ;;  %v1735_v20 = vpack.c.bf16 %v401_v19, %v400_v18  ;;  %v1738_v23 = vpack.c.bf16 %v403_v22, %v402_v21  ;;  %v404_v24 = vld [vmem:[#allocation5 + $0x60] sm:$0xff]  ;;  %v405_v25 = vld [vmem:[#allocation5 + $0x68] sm:$0xff]  ;;  %v406_v29 = vld [vmem:[#allocation5 + $0x70] sm:$0xff]  ;;  %p2124_p10 = scmp.ne.s32.totalorder %s1182_s15, %s2123_s19  ;;  %s2240_s24 = smov [#allocation10]  }
  0x8d   : > { %v1741_v27 = vpack.c.bf16 %v405_v25, %v404_v24  ;;  %v407_v30 = vld [vmem:[#allocation5 + $0x78] sm:$0xff]  ;;  %v500_v41 = vld [vmem:[#allocation7] sm:$0xff]  ;;  %v501_v42 = vld [vmem:[#allocation7 + $0x8] sm:$0xff]  ;;  %s2127_s14 = sshll.u32 %s2240_s24, 4  ;;  %s2128_s14 = int_to_ptr.vmem [resolvable:$false] %s2127_s14 }
  0x8e   : > { %v380_v16 = vmul.f32 1.442695, %v379_v15  ;;  %v1744_v32 = vpack.c.bf16 %v407_v30, %v406_v29  ;;  %v1747_v43 = vpack.c.bf16 %v501_v42, %v500_v41  ;;  %v502_v44 = vld [vmem:[#allocation7 + $0x10] sm:$0xff]  ;;  %v503_v45 = vld [vmem:[#allocation7 + $0x18] sm:$0xff]  ;;  %v504_v47 = vld [vmem:[#allocation7 + $0x20] sm:$0xff]  ;;  %p2125_p3 = pnand %p2124_p10, %p2441_p5  ;;  %s2129_s16 = scalar_lea.vmem %s2128_s14, 256 }
  0x8f   : > { %1727 = vmatpush3.bf16.msra.mxu0 %v1726_v7  ;;  %v1750_v46 = vpack.c.bf16 %v503_v45, %v502_v44  ;;  %v505_v48 = vld [vmem:[#allocation7 + $0x28] sm:$0xff]  ;;  %v506_v50 = vld [vmem:[#allocation7 + $0x30] sm:$0xff]  ;;  %v507_v51 = vld [vmem:[#allocation7 + $0x38] sm:$0xff]  ;;  %p2130_p12 = scmp.lt.s32.totalorder %s1182_s15, %s2128_s14  ;;  %p2131_p1 = scmp.lt.s32.totalorder %s2129_s16, %s2123_s19 }
  0x90   : > { %1728 = vmatprep.subr.bf16.mxu0 %v2237_v0  ;;  %1977 = vpow2.f32 %v380_v16  ;;  %1748 = vmatpush3.bf16.msra.mxu1 %v1747_v43  ;;  %v1753_v49 = vpack.c.bf16 %v505_v48, %v504_v47  ;;  %v1756_v52 = vpack.c.bf16 %v507_v51, %v506_v50  ;;  %v508_v53 = vld [vmem:[#allocation7 + $0x40] sm:$0xff]  ;;  %v509_v54 = vld [vmem:[#allocation7 + $0x48] sm:$0xff]  ;;  %v510_v56 = vld [vmem:[#allocation7 + $0x50] sm:$0xff]  ;;  %p2126_p7 = pneg %p2125_p3 }
  0x91   : > { %1749 = vmatprep.subr.bf16.mxu1 %v2237_v0  ;;  %v1759_v55 = vpack.c.bf16 %v509_v54, %v508_v53  ;;  %v511_v57 = vld [vmem:[#allocation7 + $0x58] sm:$0xff]  ;;  %v512_v59 = vld [vmem:[#allocation7 + $0x60] sm:$0xff]  ;;  %v513_v60 = vld [vmem:[#allocation7 + $0x68] sm:$0xff]  ;;  %p2132_p2 = por %p2131_p1, %p2130_p12 }
  0x92   : > { %v1762_v58 = vpack.c.bf16 %v511_v57, %v510_v56  ;;  %v1765_v61 = vpack.c.bf16 %v513_v60, %v512_v59  ;;  %v514_v62 = vld [vmem:[#allocation7 + $0x70] sm:$0xff]  ;;  %v515_v63 = vld [vmem:[#allocation7 + $0x78] sm:$0xff]  ;;  %v610_v22 = vld [vmem:[#allocation5 + $0x80] sm:$0xff] }
  0x93   : > { %1730 = vmatpush3.bf16.msra.mxu0 %v1729_v12  ;;  %v1768_v2 = vpack.c.bf16 %v515_v63, %v514_v62  ;;  %v1340_v3 = vld [vmem:[%s2695_s2] ss:$0 sm:$0xff]  ;;  %v615_v29 = vld [vmem:[#allocation5 + $0xa8] sm:$0xff]  ;;  %v625_v44 = vld [vmem:[#allocation5 + $0xf8] sm:$0xff]  ;;  %p2133_p4 = pnand %p2132_p2, %p2126_p7 }
  0x94   : > { %1731 = vmatprep.subr.bf16.mxu0 %v2237_v0  ;;  %1751 = vmatpush3.bf16.msra.mxu1 %v1750_v46  ;;  %v612_v25 = vld [vmem:[#allocation5 + $0x90] sm:$0xff]  ;;  %v623_v41 = vld [vmem:[#allocation5 + $0xe8] sm:$0xff] }
  0x95   : > { %1752 = vmatprep.subr.bf16.mxu1 %v2237_v0  ;;  %v624_v43 = vld [vmem:[#allocation5 + $0xf0] sm:$0xff] }
  0x96   : > { %v1792_v45 = vpack.c.bf16 %v625_v44, %v624_v43  ;;  %v1341_v46 = vld [vmem:[%s2697_s4] ss:$0 sm:$0xff] }
  0x97   : > { %1733 = vmatpush3.bf16.msra.mxu0 %v1732_v17 }
  0x98   : > { %1734 = vmatprep.subr.bf16.mxu0 %v2237_v0  ;;  %1754 = vmatpush3.bf16.msra.mxu1 %v1753_v49 }
  0x99   : > { %1755 = vmatprep.subr.bf16.mxu1 %v2237_v0 }
  0x9a   : > { %v1978_v26 = vpop.eup %1977 }
  0x9b   : > { %1736 = vmatpush3.bf16.msra.mxu0 %v1735_v20  ;;  %v382_v28 = vadd.f32 1.0, %v1978_v26  ;;  %v385_v31 = vmul.f32 -0.5, %v1978_v26  ;;  %v388_v34 = vand.u32 2147483647, %v1978_v26 }
  0x9c   : > { %1737 = vmatprep.subr.bf16.mxu0 %v2237_v0  ;;  %1757 = vmatpush3.bf16.msra.mxu1 %v1756_v52 }
  0x9d   : > { %1979 = vlog2.f32 %v382_v28  ;;  %v386_v33 = vadd.f32 1.0, %v385_v31  ;;  %vm389_vm1 = vcmp.lt.f32.partialorder %v388_v34, 0.0004427343  ;;  %1758 = vmatprep.subr.bf16.mxu1 %v2237_v0  ;;  %v614_v28 = vld [vmem:[#allocation5 + $0xa0] sm:$0xff]  ;;  %v616_v31 = vld [vmem:[#allocation5 + $0xb0] sm:$0xff] }
  0x9e   : > { %v1777_v30 = vpack.c.bf16 %v615_v29, %v614_v28  ;;  %v618_v34 = vld [vmem:[#allocation5 + $0xc0] sm:$0xff] }
  0x9f   : > { %1739 = vmatpush3.bf16.msra.mxu0 %v1738_v23  ;;  %v387_v35 = vmul.f32 %v1978_v26, %v386_v33  ;;  %v611_v23 = vld [vmem:[#allocation5 + $0x88] sm:$0xff]  ;;  %v613_v26 = vld [vmem:[#allocation5 + $0x98] sm:$0xff] }
  0xa0   : > { %1740 = vmatprep.subr.bf16.mxu0 %v2237_v0  ;;  %1760 = vmatpush3.bf16.msra.mxu1 %v1759_v55  ;;  %v1771_v24 = vpack.c.bf16 %v611_v23, %v610_v22  ;;  %v733_v22 = vld [vmem:[#allocation7 + $0xe8] sm:$0xff] }
  0xa1   : > { %1761 = vmatprep.subr.bf16.mxu1 %v2237_v0 }
  0xa3   : > { %1742 = vmatpush3.bf16.msra.mxu0 %v1741_v27  ;;  %v1774_v27 = vpack.c.bf16 %v613_v26, %v612_v25  ;;  %v735_v25 = vld [vmem:[#allocation7 + $0xf8] sm:$0xff] }
  0xa4   : > { %1743 = vmatprep.subr.bf16.mxu0 %v2237_v0  ;;  %1763 = vmatpush3.bf16.msra.mxu1 %v1762_v58 }
  0xa5   : > { %1764 = vmatprep.subr.bf16.mxu1 %v2237_v0 }
  0xa7   : > { %1745 = vmatpush3.bf16.msra.mxu0 %v1744_v32  ;;  %v1980_v36 = vpop.eup %1979  ;;  %v617_v32 = vld [vmem:[#allocation5 + $0xb8] sm:$0xff] }
  0xa8   : > { %1770 = vmatprep.subr.bf16.mxu0 %v2237_v0  ;;  %v384_v38 = vmul.f32 0.6931472, %v1980_v36  ;;  %1766 = vmatpush3.bf16.msra.mxu1 %v1765_v61  ;;  %v1780_v33 = vpack.c.bf16 %v617_v32, %v616_v31 }
  0xa9   : > { %1767 = vmatprep.subr.bf16.mxu1 %v2237_v0 }
  0xaa   : > { %v390_v39 = vsel %vm389_vm1, %v387_v35, %v384_v38  ;;  %v619_v35 = vld [vmem:[#allocation5 + $0xc8] sm:$0xff]  ;;  %v621_v38 = vld [vmem:[#allocation5 + $0xd8] sm:$0xff] }
  0xab   : > { %v391_v40 = vadd.f32 %v390_v39, %v377_v37  ;;  %v1783_v36 = vpack.c.bf16 %v619_v35, %v618_v34  ;;  %v620_v37 = vld [vmem:[#allocation5 + $0xd0] sm:$0xff] }
  0xac   : > { %1769 = vmatpush3.bf16.msra.mxu1 %v1768_v2  ;;  %v1786_v39 = vpack.c.bf16 %v621_v38, %v620_v37  ;;  %v720_v2 = vld [vmem:[#allocation7 + $0x80] sm:$0xff] }
  0xad   : > { %1510 = vmatmul.mubr.f32.vlgmr.msra.gmra.mrb[0].mxu0 %v391_v40  ;;  %1794 = vmatprep.subr.bf16.mxu1 %v2237_v0  ;;  %v622_v40 = vld [vmem:[#allocation5 + $0xe0] sm:$0xff] }
  0xae   : > { %1579 = vmatprep.mubr.msk.f32.mxu0 %vm2238_vm0, %v2239_v1  ;;  %1772 = vmatpush3.bf16.msra.mxu0 %v1771_v24  ;;  %v1789_v42 = vpack.c.bf16 %v623_v41, %v622_v40  ;;  %v734_v24 = vld [vmem:[#allocation7 + $0xf0] sm:$0xff] }
  0xaf   : > { %1773 = vmatprep.subr.bf16.mxu0 %v2237_v0  ;;  %v1816_v26 = vpack.c.bf16 %v735_v25, %v734_v24 }
  0xb2   : > { %1775 = vmatpush3.bf16.msra.mxu0 %v1774_v27  ;;  %v1343_v27 = vld [vmem:[%s2695_s2 + $0x1] ss:$0 sm:$0xff] }
  0xb3   : > { %1776 = vmatprep.subr.bf16.mxu0 %v2237_v0 }
  0xb6   : > { %1778 = vmatpush3.bf16.msra.mxu0 %v1777_v30 }
  0xb7   : > { %1779 = vmatprep.subr.bf16.mxu0 %v2237_v0 }
  0xba   : > { %1781 = vmatpush3.bf16.msra.mxu0 %v1780_v33 }
  0xbb   : > { %1782 = vmatprep.subr.bf16.mxu0 %v2237_v0 }
  0xbe   : > { %1784 = vmatpush3.bf16.msra.mxu0 %v1783_v36 }
  0xbf   : > { %1785 = vmatprep.subr.bf16.mxu0 %v2237_v0 }
  0xc2   : > { %1787 = vmatpush3.bf16.msra.mxu0 %v1786_v39 }
  0xc3   : > { %1788 = vmatprep.subr.bf16.mxu0 %v2237_v0 }
  0xc6   : > { %1790 = vmatpush3.bf16.msra.mxu0 %v1789_v42 }
  0xc7   : > { %1791 = vmatprep.subr.bf16.mxu0 %v2237_v0 }
  0xca   : > { %1793 = vmatpush3.bf16.msra.mxu0 %v1792_v45  ;;  %v832_v45 = vld [vmem:[#allocation5 + $0x100] sm:$0xff] }
  0xcb   : > { %1818 = vmatprep.subr.bf16.mxu0 %v2237_v0 }
 0x180   : > { %v481_v4 = vpop.f32.mrb[0].mxu0 }
 0x181   : > { %v482_v5 = vadd.f32 %v1340_v3, %v481_v4  ;;  %v1511_v6 = vpop.f32.mrb[1].mxu0  ;;  %v721_v3 = vld [vmem:[#allocation7 + $0x88] sm:$0xff] }
 0x182   : > { %v1795_v4 = vpack.c.bf16 %v721_v3, %v720_v2  ;;  %v723_v6 = vld [vmem:[#allocation7 + $0x98] sm:$0xff]  ;;  %v845_v2 = vld [vmem:[#allocation5 + $0x168] sm:$0xff] }
 0x183   : > { %v486_v7 = vand.u32 2147483647, %v482_v5  ;;  %v485_v19 = vmax.f32 %v482_v5, 0.0  ;;  %v722_v5 = vld [vmem:[#allocation7 + $0x90] sm:$0xff] }
 0x185   : > { %v487_v8 = vsub.f32 0.0, %v486_v7  ;;  %v1798_v7 = vpack.c.bf16 %v723_v6, %v722_v5  ;;  %v847_v5 = vld [vmem:[#allocation5 + $0x178] sm:$0xff] }
 0x187   : > { %v488_v9 = vmul.f32 1.442695, %v487_v8  ;;  %v724_v8 = vld [vmem:[#allocation7 + $0xa0] sm:$0xff] }
 0x189   : > { %1981 = vpow2.f32 %v488_v9  ;;  %v725_v9 = vld [vmem:[#allocation7 + $0xa8] sm:$0xff] }
 0x193   : > { %v1982_v11 = vpop.eup %1981 }
 0x194   : > { %v490_v12 = vadd.f32 1.0, %v1982_v11  ;;  %v493_v13 = vmul.f32 -0.5, %v1982_v11  ;;  %v496_v15 = vand.u32 2147483647, %v1982_v11 }
 0x196   : > { %1983 = vlog2.f32 %v490_v12  ;;  %v494_v14 = vadd.f32 1.0, %v493_v13  ;;  %vm497_vm2 = vcmp.lt.f32.partialorder %v496_v15, 0.0004427343  ;;  %v726_v12 = vld [vmem:[#allocation7 + $0xb0] sm:$0xff]  ;;  %v727_v13 = vld [vmem:[#allocation7 + $0xb8] sm:$0xff]  ;;  %v728_v15 = vld [vmem:[#allocation7 + $0xc0] sm:$0xff] }
 0x198   : > { %v495_v18 = vmul.f32 %v1982_v11, %v494_v14  ;;  %v1801_v11 = vpack.c.bf16 %v725_v9, %v724_v8  ;;  %v1804_v14 = vpack.c.bf16 %v727_v13, %v726_v12 }
 0x1a0   : > { %v1984_v16 = vpop.eup %1983 }
 0x1a1   : > { %v492_v17 = vmul.f32 0.6931472, %v1984_v16  ;;  %v729_v16 = vld [vmem:[#allocation7 + $0xc8] sm:$0xff] }
 0x1a3   : > { %v498_v20 = vsel %vm497_vm2, %v495_v18, %v492_v17  ;;  %v1807_v17 = vpack.c.bf16 %v729_v16, %v728_v15  ;;  %v730_v18 = vld [vmem:[#allocation7 + $0xd0] sm:$0xff] }
 0x1a4   : > { %v499_v21 = vadd.f32 %v498_v20, %v485_v19  ;;  %v731_v19 = vld [vmem:[#allocation7 + $0xd8] sm:$0xff] }
 0x1a5   : > { %v1810_v20 = vpack.c.bf16 %v731_v19, %v730_v18 }
 0x1a6   : > { %1545 = vmatmul.mubr.f32.vlgmr.msra.gmra.mrb[0].mxu1 %v499_v21  ;;  %v732_v21 = vld [vmem:[#allocation7 + $0xe0] sm:$0xff] }
 0x1a7   : > { %1614 = vmatprep.mubr.msk.f32.mxu1 %vm2238_vm0, %v2239_v1  ;;  %1796 = vmatpush3.bf16.msra.mxu1 %v1795_v4  ;;  %v1813_v23 = vpack.c.bf16 %v733_v22, %v732_v21  ;;  %v846_v4 = vld [vmem:[#allocation5 + $0x170] sm:$0xff] }
 0x1a8   : > { %1797 = vmatprep.subr.bf16.mxu1 %v2237_v0  ;;  %v1840_v6 = vpack.c.bf16 %v847_v5, %v846_v4  ;;  %v1052_v5 = vld [vmem:[#allocation8] sm:$0xff] }
 0x1ab   : > { %1799 = vmatpush3.bf16.msra.mxu1 %v1798_v7  ;;  %v1345_v7 = vld [vmem:[%s2697_s4 + $0x1] ss:$0 sm:$0xff] }
 0x1ac   : > { %1800 = vmatprep.subr.bf16.mxu1 %v2237_v0 }
 0x1af   : > { %1802 = vmatpush3.bf16.msra.mxu1 %v1801_v11 }
 0x1b0   : > { %1803 = vmatprep.subr.bf16.mxu1 %v2237_v0 }
 0x1b3   : > { %1805 = vmatpush3.bf16.msra.mxu1 %v1804_v14 }
 0x1b4   : > { %1806 = vmatprep.subr.bf16.mxu1 %v2237_v0 }
 0x1b7   : > { %1808 = vmatpush3.bf16.msra.mxu1 %v1807_v17 }
 0x1b8   : > { %1809 = vmatprep.subr.bf16.mxu1 %v2237_v0 }
 0x1bb   : > { %1811 = vmatpush3.bf16.msra.mxu1 %v1810_v20 }
 0x1bc   : > { %1812 = vmatprep.subr.bf16.mxu1 %v2237_v0 }
 0x1bf   : > { %1814 = vmatpush3.bf16.msra.mxu1 %v1813_v23 }
 0x1c0   : > { %1815 = vmatprep.subr.bf16.mxu1 %v2237_v0 }
 0x1c3   : > { %1817 = vmatpush3.bf16.msra.mxu1 %v1816_v26  ;;  %v942_v26 = vld [vmem:[#allocation7 + $0x100] sm:$0xff] }
 0x1c4   : > { %1842 = vmatprep.subr.bf16.mxu1 %v2237_v0 }
 0x279   : > { %v589_v47 = vpop.f32.mrb[0].mxu1 }
 0x27a   : > { %v590_v48 = vadd.f32 %v1341_v46, %v589_v47  ;;  %v1546_v49 = vpop.f32.mrb[1].mxu1  ;;  %v833_v46 = vld [vmem:[#allocation5 + $0x108] sm:$0xff] }
 0x27b   : > { %v1819_v47 = vpack.c.bf16 %v833_v46, %v832_v45  ;;  %v835_v49 = vld [vmem:[#allocation5 + $0x118] sm:$0xff]  ;;  %v956_v46 = vld [vmem:[#allocation7 + $0x170] sm:$0xff] }
 0x27c   : > { %v2550_v50 = vadd.f32 %v590_v48, %v2512_v10  ;;  %v834_v48 = vld [vmem:[#allocation5 + $0x110] sm:$0xff] }
 0x27e   : > { %v595_v51 = vand.u32 2147483647, %v2550_v50  ;;  %v594_v62 = vmax.f32 %v2550_v50, 0.0 }
 0x280   : > { %v596_v52 = vsub.f32 0.0, %v595_v51  ;;  %v1822_v51 = vpack.c.bf16 %v835_v49, %v834_v48  ;;  %v1347_v49 = vld [vmem:[%s2695_s2 + $0x2] ss:$0 sm:$0xff] }
 0x282   : > { %v597_v53 = vmul.f32 1.442695, %v596_v52  ;;  %v836_v52 = vld [vmem:[#allocation5 + $0x120] sm:$0xff] }
 0x284   : > { %1985 = vpow2.f32 %v597_v53  ;;  %v837_v53 = vld [vmem:[#allocation5 + $0x128] sm:$0xff] }
 0x28e   : > { %v1986_v54 = vpop.eup %1985 }
 0x28f   : > { %v599_v55 = vadd.f32 1.0, %v1986_v54  ;;  %v602_v56 = vmul.f32 -0.5, %v1986_v54  ;;  %v605_v58 = vand.u32 2147483647, %v1986_v54 }
 0x291   : > { %1987 = vlog2.f32 %v599_v55  ;;  %v603_v57 = vadd.f32 1.0, %v602_v56  ;;  %vm606_vm3 = vcmp.lt.f32.partialorder %v605_v58, 0.0004427343  ;;  %v838_v55 = vld [vmem:[#allocation5 + $0x130] sm:$0xff]  ;;  %v839_v56 = vld [vmem:[#allocation5 + $0x138] sm:$0xff]  ;;  %v840_v58 = vld [vmem:[#allocation5 + $0x140] sm:$0xff] }
 0x293   : > { %v604_v61 = vmul.f32 %v1986_v54, %v603_v57  ;;  %v1825_v54 = vpack.c.bf16 %v837_v53, %v836_v52  ;;  %v1828_v57 = vpack.c.bf16 %v839_v56, %v838_v55 }
 0x29b   : > { %v1988_v59 = vpop.eup %1987 }
 0x29c   : > { %v601_v60 = vmul.f32 0.6931472, %v1988_v59  ;;  %v841_v59 = vld [vmem:[#allocation5 + $0x148] sm:$0xff] }
 0x29e   : > { %v607_v63 = vsel %vm606_vm3, %v604_v61, %v601_v60  ;;  %v1831_v60 = vpack.c.bf16 %v841_v59, %v840_v58  ;;  %v842_v61 = vld [vmem:[#allocation5 + $0x150] sm:$0xff] }
 0x29f   : > { %v608_v10 = vadd.f32 %v607_v63, %v594_v62  ;;  %v843_v62 = vld [vmem:[#allocation5 + $0x158] sm:$0xff] }
 0x2a0   : > { %v1834_v63 = vpack.c.bf16 %v843_v62, %v842_v61 }
 0x2a1   : > { %1580 = vmatmul.mubr.f32.vlgmr.msra.gmra.mrb[2].mxu0 %v608_v10  ;;  %v844_v10 = vld [vmem:[#allocation5 + $0x160] sm:$0xff] }
 0x2a2   : > { %1649 = vmatprep.mubr.msk.f32.mxu0 %vm2238_vm0, %v2239_v1  ;;  %1820 = vmatpush3.bf16.msra.mxu0 %v1819_v47  ;;  %v1837_v3 = vpack.c.bf16 %v845_v2, %v844_v10  ;;  %v957_v47 = vld [vmem:[#allocation7 + $0x178] sm:$0xff] }
 0x2a3   : > { %1821 = vmatprep.subr.bf16.mxu0 %v2237_v0  ;;  %v1864_v48 = vpack.c.bf16 %v957_v47, %v956_v46 }
 0x2a6   : > { %1823 = vmatpush3.bf16.msra.mxu0 %v1822_v51 }
 0x2a7   : > { %1824 = vmatprep.subr.bf16.mxu0 %v2237_v0 }
 0x2aa   : > { %1826 = vmatpush3.bf16.msra.mxu0 %v1825_v54 }
 0x2ab   : > { %1827 = vmatprep.subr.bf16.mxu0 %v2237_v0 }
 0x2ae   : > { %1829 = vmatpush3.bf16.msra.mxu0 %v1828_v57 }
 0x2af   : > { %1830 = vmatprep.subr.bf16.mxu0 %v2237_v0 }
 0x2b2   : > { %1832 = vmatpush3.bf16.msra.mxu0 %v1831_v60 }
 0x2b3   : > { %1833 = vmatprep.subr.bf16.mxu0 %v2237_v0 }
 0x2b6   : > { %1835 = vmatpush3.bf16.msra.mxu0 %v1834_v63 }
 0x2b7   : > { %1836 = vmatprep.subr.bf16.mxu0 %v2237_v0 }
 0x2ba   : > { %1838 = vmatpush3.bf16.msra.mxu0 %v1837_v3 }
 0x2bb   : > { %1839 = vmatprep.subr.bf16.mxu0 %v2237_v0 }
 0x2be   : > { %1841 = vmatpush3.bf16.msra.mxu0 %v1840_v6  ;;  %v1053_v6 = vld [vmem:[#allocation8 + $0x8] sm:$0xff] }
 0x2bf   : > { %1866 = vmatprep.subr.bf16.mxu0 %v2237_v0 }
 0x374   : > { %v700_v28 = vpop.f32.mrb[2].mxu0 }
 0x375   : > { %v701_v29 = vadd.f32 %v1343_v27, %v700_v28  ;;  %v1581_v30 = vpop.f32.mrb[3].mxu0  ;;  %v943_v27 = vld [vmem:[#allocation7 + $0x108] sm:$0xff] }
 0x376   : > { %v1843_v28 = vpack.c.bf16 %v943_v27, %v942_v26  ;;  %v945_v30 = vld [vmem:[#allocation7 + $0x118] sm:$0xff]  ;;  %v1066_v27 = vld [vmem:[#allocation8 + $0x70] sm:$0xff] }
 0x377   : > { %v705_v31 = vand.u32 2147483647, %v701_v29  ;;  %v704_v42 = vmax.f32 %v701_v29, 0.0  ;;  %v944_v29 = vld [vmem:[#allocation7 + $0x110] sm:$0xff] }
 0x379   : > { %v706_v32 = vsub.f32 0.0, %v705_v31  ;;  %v1846_v31 = vpack.c.bf16 %v945_v30, %v944_v29  ;;  %v1349_v30 = vld [vmem:[%s2697_s4 + $0x2] ss:$0 sm:$0xff] }
 0x37b   : > { %v707_v33 = vmul.f32 1.442695, %v706_v32  ;;  %v946_v32 = vld [vmem:[#allocation7 + $0x120] sm:$0xff] }
 0x37d   : > { %1989 = vpow2.f32 %v707_v33  ;;  %v947_v33 = vld [vmem:[#allocation7 + $0x128] sm:$0xff] }
 0x387   : > { %v1990_v34 = vpop.eup %1989 }
 0x388   : > { %v709_v35 = vadd.f32 1.0, %v1990_v34  ;;  %v712_v36 = vmul.f32 -0.5, %v1990_v34  ;;  %v715_v38 = vand.u32 2147483647, %v1990_v34 }
 0x38a   : > { %1991 = vlog2.f32 %v709_v35  ;;  %v713_v37 = vadd.f32 1.0, %v712_v36  ;;  %vm716_vm4 = vcmp.lt.f32.partialorder %v715_v38, 0.0004427343  ;;  %v948_v35 = vld [vmem:[#allocation7 + $0x130] sm:$0xff]  ;;  %v951_v38 = vld [vmem:[#allocation7 + $0x148] sm:$0xff] }
 0x38c   : > { %v714_v41 = vmul.f32 %v1990_v34, %v713_v37  ;;  %v1849_v34 = vpack.c.bf16 %v947_v33, %v946_v32  ;;  %v950_v37 = vld [vmem:[#allocation7 + $0x140] sm:$0xff] }
 0x394   : > { %v1992_v39 = vpop.eup %1991 }
 0x395   : > { %v711_v40 = vmul.f32 0.6931472, %v1992_v39  ;;  %v1855_v39 = vpack.c.bf16 %v951_v38, %v950_v37 }
 0x397   : > { %v717_v43 = vsel %vm716_vm4, %v714_v41, %v711_v40  ;;  %v952_v40 = vld [vmem:[#allocation7 + $0x150] sm:$0xff]  ;;  %v953_v41 = vld [vmem:[#allocation7 + $0x158] sm:$0xff] }
 0x398   : > { %v718_v44 = vadd.f32 %v717_v43, %v704_v42  ;;  %v1858_v42 = vpack.c.bf16 %v953_v41, %v952_v40  ;;  %v954_v43 = vld [vmem:[#allocation7 + $0x160] sm:$0xff] }
 0x39a   : > { %1615 = vmatmul.mubr.f32.vlgmr.msra.gmra.mrb[2].mxu1 %v718_v44  ;;  %v955_v44 = vld [vmem:[#allocation7 + $0x168] sm:$0xff] }
 0x39b   : > { %1684 = vmatprep.mubr.msk.f32.mxu1 %vm2238_vm0, %v2239_v1  ;;  %1844 = vmatpush3.bf16.msra.mxu1 %v1843_v28  ;;  %v1861_v45 = vpack.c.bf16 %v955_v44, %v954_v43  ;;  %v1067_v28 = vld [vmem:[#allocation8 + $0x78] sm:$0xff] }
 0x39c   : > { %1845 = vmatprep.subr.bf16.mxu1 %v2237_v0  ;;  %v1888_v29 = vpack.c.bf16 %v1067_v28, %v1066_v27 }
 0x39f   : > { %1847 = vmatpush3.bf16.msra.mxu1 %v1846_v31 }
 0x3a0   : > { %1848 = vmatprep.subr.bf16.mxu1 %v2237_v0 }
 0x3a3   : > { %1850 = vmatpush3.bf16.msra.mxu1 %v1849_v34 }
 0x3a4   : > { %1851 = vmatprep.subr.bf16.mxu1 %v2237_v0 }
 0x46d   : > { %v810_v8 = vpop.f32.mrb[2].mxu1 }
 0x46e   : > { %v811_v9 = vadd.f32 %v1345_v7, %v810_v8  ;;  %v1616_v11 = vpop.f32.mrb[3].mxu1  ;;  %v1867_v7 = vpack.c.bf16 %v1053_v6, %v1052_v5  ;;  %v1054_v8 = vld [vmem:[#allocation8 + $0x10] sm:$0xff] }
 0x470   : > { %v2581_v12 = vadd.f32 %v811_v9, %v2550_v50  ;;  %v1055_v9 = vld [vmem:[#allocation8 + $0x18] sm:$0xff] }
 0x471   : > { %v1870_v11 = vpack.c.bf16 %v1055_v9, %v1054_v8 }
 0x472   : > { %v817_v13 = vand.u32 2147483647, %v2581_v12  ;;  %815 = vst [vmem:[%s368_s21] sm:$0xff] %v2581_v12  ;;  %v816_v50 = vmax.f32 %v2581_v12, 0.0 }
 0x474   : > { %v818_v14 = vsub.f32 0.0, %v817_v13  ;;  %v1056_v13 = vld [vmem:[#allocation8 + $0x20] sm:$0xff] }
 0x476   : > { %v819_v15 = vmul.f32 1.442695, %v818_v14  ;;  %v1057_v14 = vld [vmem:[#allocation8 + $0x28] sm:$0xff] }
 0x478   : > { %1993 = vpow2.f32 %v819_v15  ;;  %v1873_v15 = vpack.c.bf16 %v1057_v14, %v1056_v13 }
 0x482   : > { %v1994_v16 = vpop.eup %1993 }
 0x483   : > { %v821_v17 = vadd.f32 1.0, %v1994_v16  ;;  %v824_v18 = vmul.f32 -0.5, %v1994_v16  ;;  %v827_v20 = vand.u32 2147483647, %v1994_v16 }
 0x485   : > { %1995 = vlog2.f32 %v821_v17  ;;  %v825_v19 = vadd.f32 1.0, %v824_v18  ;;  %vm828_vm5 = vcmp.lt.f32.partialorder %v827_v20, 0.0004427343  ;;  %v1059_v17 = vld [vmem:[#allocation8 + $0x38] sm:$0xff]  ;;  %v1061_v20 = vld [vmem:[#allocation8 + $0x48] sm:$0xff] }
 0x487   : > { %v826_v23 = vmul.f32 %v1994_v16, %v825_v19  ;;  %v1058_v16 = vld [vmem:[#allocation8 + $0x30] sm:$0xff]  ;;  %v1060_v19 = vld [vmem:[#allocation8 + $0x40] sm:$0xff] }
 0x488   : > { %v1876_v18 = vpack.c.bf16 %v1059_v17, %v1058_v16 }
 0x48f   : > { %v1996_v21 = vpop.eup %1995 }
 0x490   : > { %v823_v22 = vmul.f32 0.6931472, %v1996_v21  ;;  %v1879_v21 = vpack.c.bf16 %v1061_v20, %v1060_v19 }
 0x492   : > { %v829_v24 = vsel %vm828_vm5, %v826_v23, %v823_v22  ;;  %v1062_v22 = vld [vmem:[#allocation8 + $0x50] sm:$0xff]  ;;  %v1063_v23 = vld [vmem:[#allocation8 + $0x58] sm:$0xff] }
 0x493   : > { %v830_v25 = vadd.f32 %v829_v24, %v816_v50  ;;  %v1882_v50 = vpack.c.bf16 %v1063_v23, %v1062_v22  ;;  %v1064_v24 = vld [vmem:[#allocation8 + $0x60] sm:$0xff] }
 0x495   : > { %1650 = vmatmul.mubr.f32.vlgmr.msra.gmra.mrb[4].mxu0 %v830_v25  ;;  %v1065_v25 = vld [vmem:[#allocation8 + $0x68] sm:$0xff] }
 0x496   : > { %1719 = vmatprep.mubr.msk.f32.mxu0 %vm2238_vm0, %v2239_v1  ;;  %v949_v1 = vld [vmem:[#allocation7 + $0x138] sm:$0xff]  ;;  %1868 = vmatpush3.bf16.msra.mxu0 %v1867_v7  ;;  %v1885_v26 = vpack.c.bf16 %v1065_v25, %v1064_v24 }
 0x497   : > { %v1852_v36 = vpack.c.bf16 %v949_v1, %v948_v35  ;;  %1869 = vmatprep.subr.bf16.mxu0 %v2237_v0 }
 0x499   : > { %1853 = vmatpush3.bf16.msra.mxu1 %v1852_v36 }
 0x49a   : > { %1854 = vmatprep.subr.bf16.mxu1 %v2237_v0  ;;  %1871 = vmatpush3.bf16.msra.mxu0 %v1870_v11 }
 0x49b   : > { %1872 = vmatprep.subr.bf16.mxu0 %v2237_v0 }
 0x49d   : > { %1856 = vmatpush3.bf16.msra.mxu1 %v1855_v39 }
 0x49e   : > { %1857 = vmatprep.subr.bf16.mxu1 %v2237_v0  ;;  %1874 = vmatpush3.bf16.msra.mxu0 %v1873_v15 }
 0x49f   : > { %1875 = vmatprep.subr.bf16.mxu0 %v2237_v0 }
 0x4a1   : > { %1859 = vmatpush3.bf16.msra.mxu1 %v1858_v42 }
 0x4a2   : > { %1860 = vmatprep.subr.bf16.mxu1 %v2237_v0  ;;  %1877 = vmatpush3.bf16.msra.mxu0 %v1876_v18 }
 0x4a3   : > { %1878 = vmatprep.subr.bf16.mxu0 %v2237_v0 }
 0x4a5   : > { %1862 = vmatpush3.bf16.msra.mxu1 %v1861_v45 }
 0x4a6   : > { %1863 = vmatprep.subr.bf16.mxu1 %v2237_v0  ;;  %1880 = vmatpush3.bf16.msra.mxu0 %v1879_v21 }
 0x4a7   : > { %1881 = vmatprep.subr.bf16.mxu0 %v2237_v0 }
 0x4a9   : > { %1865 = vmatpush3.bf16.msra.mxu1 %v1864_v48 }
 0x4aa   : > { %1883 = vmatpush3.bf16.msra.mxu0 %v1882_v50 }
 0x4ab   : > { %1884 = vmatprep.subr.bf16.mxu0 %v2237_v0 }
 0x4ae   : > { %1886 = vmatpush3.bf16.msra.mxu0 %v1885_v26 }
 0x4af   : > { %1887 = vmatprep.subr.bf16.mxu0 %v2237_v0 }
 0x4b2   : > { %1889 = vmatpush3.bf16.msra.mxu0 %v1888_v29 }
 0x568   : > { %v922_v51 = vpop.f32.mrb[4].mxu0 }
 0x569   : > { %v923_v52 = vadd.f32 %v1347_v49, %v922_v51  ;;  %v1651_v53 = vpop.f32.mrb[5].mxu0 }
 0x56b   : > { %v927_v54 = vand.u32 2147483647, %v923_v52  ;;  %v926_v2 = vmax.f32 %v923_v52, 0.0 }
 0x56d   : > { %v928_v55 = vsub.f32 0.0, %v927_v54 }
 0x56f   : > { %v929_v56 = vmul.f32 1.442695, %v928_v55 }
 0x571   : > { %1997 = vpow2.f32 %v929_v56 }
 0x57b   : > { %v1998_v57 = vpop.eup %1997 }
 0x57c   : > { %v931_v58 = vadd.f32 1.0, %v1998_v57  ;;  %v934_v59 = vmul.f32 -0.5, %v1998_v57  ;;  %v937_v61 = vand.u32 2147483647, %v1998_v57 }
 0x57e   : > { %1999 = vlog2.f32 %v931_v58  ;;  %v935_v60 = vadd.f32 1.0, %v934_v59  ;;  %vm938_vm6 = vcmp.lt.f32.partialorder %v937_v61, 0.0004427343 }
 0x580   : > { %v936_v10 = vmul.f32 %v1998_v57, %v935_v60 }
 0x588   : > { %v2000_v62 = vpop.eup %1999 }
 0x589   : > { %v933_v63 = vmul.f32 0.6931472, %v2000_v62 }
 0x58b   : > { %v939_v3 = vsel %vm938_vm6, %v936_v10, %v933_v63 }
 0x58c   : > { %v940_v4 = vadd.f32 %v939_v3, %v926_v2 }
 0x58e   : > { %1685 = vmatmul.mubr.f32.vlgmr.msra.gmra.mrb[4].mxu1 %v940_v4 }
 0x661   : > { %v1032_v31 = vpop.f32.mrb[4].mxu1 }
 0x662   : > { %v1033_v32 = vadd.f32 %v1349_v30, %v1032_v31  ;;  %v1686_v33 = vpop.f32.mrb[5].mxu1 }
 0x664   : > { %v1036_v34 = vadd.f32 %v1033_v32, %v2581_v12 }
 0x666   : > { %v1038_v35 = vand.u32 2147483647, %v1036_v34  ;;  %v1037_v44 = vmax.f32 %v1036_v34, 0.0 }
 0x668   : > { %v1039_v1 = vsub.f32 0.0, %v1038_v35 }
 0x66a   : > { %v1040_v36 = vmul.f32 1.442695, %v1039_v1 }
 0x66c   : > { %2001 = vpow2.f32 %v1040_v36 }
 0x676   : > { %v2002_v0 = vpop.eup %2001 }
 0x677   : > { %v1042_v37 = vadd.f32 1.0, %v2002_v0  ;;  %v1045_v38 = vmul.f32 -0.5, %v2002_v0  ;;  %v1048_v40 = vand.u32 2147483647, %v2002_v0 }
 0x679   : > { %2003 = vlog2.f32 %v1042_v37  ;;  %v1046_v39 = vadd.f32 1.0, %v1045_v38  ;;  %vm1049_vm7 = vcmp.lt.f32.partialorder %v1048_v40, 0.0004427343 }
 0x67b   : > { %v1047_v43 = vmul.f32 %v2002_v0, %v1046_v39 }
 0x683   : > { %v2004_v41 = vpop.eup %2003 }
 0x684   : > { %v1044_v42 = vmul.f32 0.6931472, %v2004_v41 }
 0x686   : > { %v1050_v12 = vsel %vm1049_vm7, %v1047_v43, %v1044_v42 }
 0x687   : > { %v1051_v45 = vadd.f32 %v1050_v12, %v1037_v44 }
 0x689   : > { %1720 = vmatmul.mubr.f32.vlgmr.msra.gmra.mrb[6].mxu0 %v1051_v45 }
 0x68a   : > { %2136 = shalt.err (!%p2133_p4)
}
 0x68b   : > { %s2137_s21 = scalar_lea.hbm %s2618_s17, 128  ;;  %s2141_s13 = scalar_lea.hbm %s2700_s7, 256 }
 0x68c   : > { %p2138_p0 = scmp.ne.s32.totalorder %s2618_s17, %s2137_s21  ;;  %p2142_p8 = scmp.lt.u32.totalorder %s2618_s17, %s2700_s7 }
 0x68d   : > { %p2143_p13 = scmp.lt.u32.totalorder %s2141_s13, %s2137_s21  ;;  %p2145_p10 = scmp.lt.u32.totalorder %s2137_s21, %s2618_s17 }
 0x68e   : > { %p2139_p9 = pnand %p2138_p0, %p2441_p5 }
 0x68f   : > { %p2144_p6 = por %p2143_p13, %p2142_p8 }
 0x690   : > { %p2140_p11 = pneg %p2139_p9 }
 0x691   : > { %p2146_p3 = por %p2145_p10, %p2144_p6 }
 0x693   : > { %p2147_p7 = pnand %p2146_p3, %p2140_p11 }
 0x695   : > { %2150 = shalt.err (!%p2147_p7)
}
 0x696   : > { %1904 = dma.vmem_to_hbm [thread:$0]  (%p2441_p5), %s1182_s15, 128, %s2618_s17, %s1163_s18   ;;  %v1350_v46 = vld [vmem:[%s2699_s6] ss:$0 sm:$0xff] }
 0x697   : > { %s375_s17 = scalar_lea.vmem [#allocation11], %s2489_s12  ;;  %s2649_s21 = scalar_lea.hbm %s2701_s8, %s1354_s11 }
 0x698   : > { %s1194_s15 = sshll.u32 %s375_s17, 4  ;;  %s1168_s25 = scalar_lea.sflag [#allocation12], %s2486_s27  ;;  %s2651_s15 = int_to_ptr.vmem [resolvable:$true] %s1194_s15 }
 0x699   : > { %s2151_s20 = scalar_lea.vmem %s2651_s15, 128  ;;  %s2241_s12 = smov [#allocation11]  }
 0x69a   : > { %p2152_p12 = scmp.ne.s32.totalorder %s2651_s15, %s2151_s20  ;;  %s2155_s13 = sshll.u32 %s2241_s12, 4  ;;  %s2156_s13 = int_to_ptr.vmem [resolvable:$false] %s2155_s13 }
 0x69b   : > { %s2157_s9 = scalar_lea.vmem %s2156_s13, 256  ;;  %p2158_p4 = scmp.lt.s32.totalorder %s2651_s15, %s2156_s13 }
 0x69c   : > { %p2153_p1 = pnand %p2152_p12, %p2441_p5  ;;  %p2159_p0 = scmp.lt.s32.totalorder %s2157_s9, %s2151_s20 }
 0x69e   : > { %p2154_p2 = pneg %p2153_p1  ;;  %p2160_p9 = por %p2159_p0, %p2158_p4 }
 0x6a0   : > { %p2161_p11 = pnand %p2160_p9, %p2154_p2 }
 0x75c   : > { %v1141_v47 = vpop.f32.mrb[6].mxu0 }
 0x75d   : > { %v1142_v48 = vadd.f32 %v1350_v46, %v1141_v47  ;;  %v1721_v49 = vpop.f32.mrb[7].mxu0 }
 0x75f   : > { %v1146_v51 = vand.u32 2147483647, %v1142_v48  ;;  %v1145_v62 = vmax.f32 %v1142_v48, 0.0 }
 0x761   : > { %v1147_v52 = vsub.f32 0.0, %v1146_v51 }
 0x763   : > { %v1148_v53 = vmul.f32 1.442695, %v1147_v52 }
 0x765   : > { %2005 = vpow2.f32 %v1148_v53 }
 0x76f   : > { %v2006_v54 = vpop.eup %2005 }
 0x770   : > { %v1150_v55 = vadd.f32 1.0, %v2006_v54  ;;  %v1153_v56 = vmul.f32 -0.5, %v2006_v54  ;;  %v1156_v58 = vand.u32 2147483647, %v2006_v54 }
 0x772   : > { %2007 = vlog2.f32 %v1150_v55  ;;  %v1154_v57 = vadd.f32 1.0, %v1153_v56  ;;  %vm1157_vm8 = vcmp.lt.f32.partialorder %v1156_v58, 0.0004427343 }
 0x774   : > { %v1155_v61 = vmul.f32 %v2006_v54, %v1154_v57 }
 0x77c   : > { %v2008_v59 = vpop.eup %2007 }
 0x77d   : > { %v1152_v60 = vmul.f32 0.6931472, %v2008_v59 }
 0x77f   : > { %v1158_v63 = vsel %vm1157_vm8, %v1155_v61, %v1152_v60 }
 0x780   : > { %v1159_v10 = vadd.f32 %v1158_v63, %v1145_v62 }
 0x782   : > { %v1351_v2 = vadd.f32 -0.6931472, %v1159_v10 }
 0x784   : > { %1161 = vst [vmem:[%s375_s17] sm:$0xff] %v1351_v2 }
 0x785   : > { %2164 = shalt.err (!%p2161_p11)
}
 0x786   : > { %s2165_s27 = scalar_lea.hbm %s2649_s21, 128  ;;  %s2169_s24 = scalar_lea.hbm %s2701_s8, 256 }
 0x787   : > { %p2166_p8 = scmp.ne.s32.totalorder %s2649_s21, %s2165_s27  ;;  %p2170_p10 = scmp.lt.u32.totalorder %s2649_s21, %s2701_s8 }
 0x788   : > { %p2171_p3 = scmp.lt.u32.totalorder %s2169_s24, %s2165_s27  ;;  %p2173_p12 = scmp.lt.u32.totalorder %s2165_s27, %s2649_s21 }
 0x789   : > { %p2167_p13 = pnand %p2166_p8, %p2441_p5 }
 0x78a   : > { %p2172_p7 = por %p2171_p3, %p2170_p10 }
 0x78b   : > { %p2168_p6 = pneg %p2167_p13 }
 0x78c   : > { %p2174_p1 = por %p2173_p12, %p2172_p7 }
 0x78e   : > { %p2175_p2 = pnand %p2174_p1, %p2168_p6 }
 0x790   : > { %2178 = shalt.err (!%p2175_p2)
}
 0x791   : > { %1905 = dma.vmem_to_hbm [thread:$0]  (%p2441_p5), %s2651_s15, 128, %s2649_s21, %s1168_s25  }
 0x792 PF: > { %s2723_s17 = sld [smem:[#allocation18_spill]]  ;;  %s2724_s18 = sld [smem:[#allocation19_spill]] }
 0x793   : > { %p2726_p0 = scmp.ge.s32.totalorder %s2229_s30, 2 }
 0x798   : > { %s1206_s16 = sand.u32 1, %s2723_s17   ;;  %p2725_p4 = scmp.ne.s32.totalorder %s2724_s18, 0 }
 0x799   : > { %s1207_s20 = scalar_lea.sflag [#allocation4], %s1206_s16 }
 0x79a   : > { %p1923_p9 = pnand %p2726_p0, %p2725_p4 }
 0x79c   : > { %2208 = dma.done.wait (!%p1923_p9), %s1207_s20, 128  }
 0x79d   : > { %2210 = vsyncadd (!%p1923_p9), %s1207_s20, 4294967168  ;;  %s1216_s12 = scalar_lea.sflag [#allocation12], %s1206_s16 }
 0x79e   : > { %2212 = dma.done.wait (!%p1923_p9), %s1216_s12, 128  }
 0x79f   : > { %2214 = vsyncadd (!%p1923_p9), %s1216_s12, 4294967168  ;;  %p27_p5 = scmp.ge.s32.totalorder %s2427_s26, 4   ;;  %s2727_s27 = smov %s2221_s28 }
 0x7a0   : > { %s2728_s28 = smov %s2225_s29  ;;  %s2729_s29 = smov %s2437_s22 }
 0x7a1   : > { %s2730_s30 = smov %s2427_s26  ;;  %29 = sbr.rel (!%p27_p5) target bundleno = 9 (0x9), region = 130 }
 0x7a8   :  { %1221 = vsyncpa [#allocation3], 1 }
 0x7a9   :  { %1223 = vsyncpa [#allocation3 + $0x1], 1 }
 0x7aa   :  { %1224 = vsyncpa [#allocation6], 1 }
 0x7ab   :  { %1225 = vsyncpa [#allocation9], 1 }
 0x7ac   :  { %1226 = vsyncpa [#allocation4], 1 }
 0x7ad   :  { %1228 = vsyncpa [#allocation4 + $0x1], 1 }
 0x7ae   :  { %1229 = vsyncpa [#allocation12], 1 }
 0x7af   :  { %1231 = vsyncpa [#allocation12 + $0x1], 1 }

// kernel: tpu_custom_call.1
= control target key start
LH: loop header
LB: loop body
LE: loop exit
PB: predicated region body
PF: predicated region fallthrough
CT: control target
= control target key end

     0   :  { %14 = vsyncpa [#allocation3], 0  ;;  %s2693_s0 = inlined_call_operand.hbm [shape: f32[16,128], index: 0, kind: input, shape index: {}]   ;;  %s2694_s1 = inlined_call_operand.hbm [shape: f32[3,128,128], index: 1, kind: input, shape index: {}]   ;;  %s2695_s2 = inlined_call_operand.vmem [shape: f32[3,1,128], index: 2, kind: input, shape index: {}]   ;;  %s2696_s3 = inlined_call_operand.hbm [shape: f32[3,128,128], index: 3, kind: input, shape index: {}]   ;;  %s2697_s4 = inlined_call_operand.vmem [shape: f32[3,1,128], index: 4, kind: input, shape index: {}]   ;;  %s2698_s5 = inlined_call_operand.hbm [shape: f32[128,128], index: 5, kind: input, shape index: {}]   ;;  %s2699_s6 = inlined_call_operand.vmem [shape: f32[1,128], index: 6, kind: input, shape index: {}]   ;;  %s2700_s7 = inlined_call_operand.hbm [shape: f32[16,128], index: 7, kind: output, shape index: {0}]   ;;  %s2701_s8 = inlined_call_operand.hbm [shape: f32[16,128], index: 8, kind: output, shape index: {1}]  }
   0x1   :  { %16 = vsyncpa [#allocation3 + $0x1], 0 }
   0x2   :  { %17 = vsyncpa [#allocation6], 0 }
   0x3   :  { %18 = vsyncpa [#allocation9], 0 }
   0x4   :  { %19 = vsyncpa [#allocation4], 0 }
   0x5   :  { %21 = vsyncpa [#allocation4 + $0x1], 0 }
   0x6   :  { %22 = vsyncpa [#allocation12], 0 }
   0x7   :  { %24 = vsyncpa [#allocation12 + $0x1], 0  ;;  %s2287_s27 = smov 0   ;;  %s2289_s28 = smov 0  }
   0x8   :  { %s2291_s29 = smov 0   ;;  %s2293_s30 = smov 0  }
   0x9 LB: > { %2707 = sst [smem:[#allocation18_spill]] %s2217_s27  ;;  %s2308_s9 = sadd.s32 4294967295, %s2229_s30   ;;  %s2229_s30 = sphi %s2293_s30, %s2730_s30   ;;  %s2225_s29 = sphi %s2291_s29, %s2729_s29   ;;  %s2221_s28 = sphi %s2289_s28, %s2728_s28   ;;  %s2217_s27 = sphi %s2287_s27, %s2727_s27  }
   0xa   : > { %s1325_s10 = sadd.s32 4294967294, %s2229_s30   ;;  %p50_p0 = scmp.ne.s32.totalorder %s2221_s28, %s2217_s27 }
   0xb   : > { %p2702_p1 = scmp.eq.s32.totalorder %s2308_s9, 0  ;;  %p206_p3 = scmp.eq.s32.totalorder %s1325_s10, 1 }
   0xc   : > { %p1326_p5 = scmp.ge.s32.totalorder %s2229_s30, 1  ;;  %p239_p7 = scmp.lt.s32.totalorder %s2229_s30, 3 }
   0xd   : > { %p2317_p4 = por %p2702_p1, %p50_p0  ;;  %p2322_p6 = por %p206_p3, %p50_p0 }
   0xe   : > { %p2327_p8 = pnand %p1326_p5, %p239_p7  ;;  %s2231_s14 = smov [#allocation5]  }
   0xf   : > { %s2708_s11 = scalar_select %p2317_p4, 1, 0 }
  0x10   : > { %s2709_s12 = scalar_select %p2322_p6, 1, 0 }
  0x11   : > { %s2711_s13 = scalar_select %p2327_p8, 1, 0 }
  0x12   : > { %2710 = sst [smem:[#allocation19_spill]] %s2709_s12  ;;  %s251_s15 = sshll.u32 %s2231_s14, 4  ;;  %s2331_s15 = int_to_ptr.vmem [resolvable:$true] %s251_s15 }
  0x13   : > { %p1908_p9 = pneg %p2327_p8  ;;  %s2232_s17 = smov [#allocation7]  }
  0x14   : > { %s267_s18 = sshll.u32 %s2232_s17, 4  ;;  %s2233_s19 = smov [#allocation8]   ;;  %s2342_s18 = int_to_ptr.vmem [resolvable:$true] %s267_s18 }
  0x15   : > { %p2338_p11 = pnand %p1908_p9, %p2702_p1  ;;  %s2344_s20 = sshll.u32 %s2233_s19, 4  ;;  %s284_s20 = int_to_ptr.vmem [resolvable:$true] %s2344_s20 }
  0x16   : > { %s2009_s23 = scalar_lea.hbm %s2694_s1, 6144 }
  0x17   : > { %p2010_p12 = scmp.ne.s32.totalorder %s2694_s1, %s2009_s23  ;;  %p2354_p13 = pneg %p2338_p11 }
  0x18   : > { %p2016_p5 = scmp.lt.u32.totalorder %s2009_s23, %s2694_s1 }
  0x19   : > { %p2012_p0 = pnand %p2354_p13, %p2010_p12 }
  0x1b   : > { %p2013_p3 = pneg %p2012_p0 }
  0x1d   : > { %p2018_p7 = pnand %p2016_p5, %p2013_p3 }
  0x1f   : > { %2021 = shalt.err (!%p2018_p7)
}
  0x20   : > { %s2022_s17 = scalar_lea.vmem %s2331_s15, 6144  ;;  %p2030_p2 = scmp.lt.s32.totalorder %s2331_s15, %s2331_s15 }
  0x21   : > { %p2023_p9 = scmp.ne.s32.totalorder %s2331_s15, %s2022_s17  ;;  %p2031_p6 = scmp.lt.s32.totalorder %s2022_s17, %s2022_s17 }
  0x23   : > { %p2025_p10 = pnand %p2023_p9, %p2354_p13  ;;  %p2032_p12 = por %p2031_p6, %p2030_p2 }
  0x25   : > { %p2026_p1 = pneg %p2025_p10 }
  0x27   : > { %p2033_p0 = pnand %p2032_p12, %p2026_p1 }
  0x29   : > { %2036 = shalt.err (!%p2033_p0)
}
  0x2a   : > { %s2234_s19 = smov 128   ;;  %s2235_s21 = smov 8  }
  0x2b   : > { %1911 = dma.hbm_to_vmem [thread:$0]  (!%p2338_p11), %s2694_s1, 6144, %s2331_s15, [#allocation6], %s2234_s19, %s2234_s19, %s2235_s21  }
  0x2c   : > { %s2037_s10 = scalar_lea.hbm %s2696_s3, 6144 }
  0x2d   : > { %p2038_p1 = scmp.ne.s32.totalorder %s2696_s3, %s2037_s10  ;;  %p2044_p10 = scmp.lt.u32.totalorder %s2037_s10, %s2696_s3 }
  0x2f   : > { %p2040_p2 = pnand %p2038_p1, %p2354_p13 }
  0x31   : > { %p2041_p6 = pneg %p2040_p2 }
  0x33   : > { %p2046_p3 = pnand %p2044_p10, %p2041_p6 }
  0x35   : > { %2049 = shalt.err (!%p2046_p3)
}
  0x36   : > { %s2050_s15 = scalar_lea.vmem %s2342_s18, 6144  ;;  %p2058_p12 = scmp.lt.s32.totalorder %s2342_s18, %s2342_s18 }
  0x37   : > { %p2051_p5 = scmp.ne.s32.totalorder %s2342_s18, %s2050_s15  ;;  %p2059_p0 = scmp.lt.s32.totalorder %s2050_s15, %s2050_s15 }
  0x39   : > { %p2053_p7 = pnand %p2051_p5, %p2354_p13  ;;  %p2060_p1 = por %p2059_p0, %p2058_p12 }
  0x3b   : > { %p2054_p9 = pneg %p2053_p7 }
  0x3d   : > { %p2061_p2 = pnand %p2060_p1, %p2054_p9 }
  0x3f   : > { %2064 = shalt.err (!%p2061_p2)
}
  0x40   : > { %1914 = dma.hbm_to_vmem [thread:$0]  (!%p2338_p11), %s2696_s3, 6144, %s2342_s18, [#allocation6], %s2234_s19, %s2234_s19, %s2235_s21  }
  0x41   : > { %s2065_s24 = scalar_lea.hbm %s2698_s5, 2048 }
  0x42   : > { %p2066_p6 = scmp.ne.s32.totalorder %s2698_s5, %s2065_s24  ;;  %p2072_p5 = scmp.lt.u32.totalorder %s2065_s24, %s2698_s5 }
  0x44   : > { %p2068_p10 = pnand %p2066_p6, %p2354_p13 }
  0x46   : > { %p2069_p3 = pneg %p2068_p10 }
  0x48   : > { %p2074_p7 = pnand %p2072_p5, %p2069_p3 }
  0x4a   : > { %2077 = shalt.err (!%p2074_p7)
}
  0x4b   : > { %s2078_s15 = scalar_lea.vmem %s284_s20, 2048  ;;  %p2086_p1 = scmp.lt.s32.totalorder %s284_s20, %s284_s20 }
  0x4c   : > { %p2079_p9 = scmp.ne.s32.totalorder %s284_s20, %s2078_s15  ;;  %p2087_p2 = scmp.lt.s32.totalorder %s2078_s15, %s2078_s15 }
  0x4e   : > { %p2081_p12 = pnand %p2079_p9, %p2354_p13  ;;  %p2088_p4 = por %p2087_p2, %p2086_p1 }
  0x50   : > { %p2082_p0 = pneg %p2081_p12 }
  0x52   : > { %p2089_p8 = pnand %p2088_p4, %p2082_p0 }
  0x54   : > { %2092 = shalt.err (!%p2089_p8)
}
  0x55   : > { %1917 = dma.hbm_to_vmem [thread:$0]  (!%p2338_p11), %s2698_s5, 2048, %s284_s20, [#allocation9], %s2234_s19, %s2234_s19, %s2235_s21  }
  0x56   : > { %s2427_s26 = sadd.s32 1, %s2229_s30   ;;  %s37_s12 = sadd.s32 1, %s2225_s29 }
  0x57   : > { %s34_s16 = ssub.s32 %s2229_s30, %s2427_s26  ;;  %p44_p8 = scmp.ne.s32.totalorder %s2225_s29, %s2221_s28 }
  0x58   : > { %p35_p4 = scmp.eq.s32.totalorder %s34_s16, 0  ;;  %p45_p13 = scmp.eq.s32.totalorder %s2229_s30, 0 }
  0x59   : > { %p1932_p6 = scmp.lt.s32.totalorder %s2229_s30, 2  ;;  %p2714_p3 = scmp.eq.s32.totalorder %s2308_s9, 1 }
  0x5a   : > { %s2437_s22 = scalar_select %p35_p4, %s2225_s29, %s37_s12  }
  0x5b   : > { %p46_p10 = por %p45_p13, %p44_p8  ;;  %p2441_p5 = por %p2714_p3, %p44_p8 }
  0x5c   : > { %s300_s24 = sand.u32 1, %s2225_s29   ;;  %s1332_s25 = sshll.u32 %s2229_s30, 7 }
  0x5d   : > { %s1331_s20 = sshll.u32 %s300_s24, 3  ;;  %s2450_s10 = scalar_lea.hbm %s2693_s0, %s1332_s25 }
  0x5e   : > { %s304_s14 = scalar_lea.vmem [#allocation2], %s1331_s20  ;;  %p2452_p11 = pnand %p1932_p6, %p46_p10 }
  0x5f   : > { %s311_s17 = sshll.u32 %s304_s14, 4  ;;  %s301_s18 = scalar_lea.sflag [#allocation3], %s300_s24  ;;  %s2456_s17 = int_to_ptr.vmem [resolvable:$true] %s311_s17 }
  0x60   : > { %s2093_s27 = scalar_lea.hbm %s2450_s10, 128  ;;  %p2095_p9 = pneg %p2452_p11 }
  0x61   : > { %p2094_p7 = scmp.ne.s32.totalorder %s2450_s10, %s2093_s27  ;;  %s2098_s25 = scalar_lea.hbm %s2693_s0, 256 }
  0x62   : > { %p2099_p1 = scmp.lt.u32.totalorder %s2450_s10, %s2693_s0  ;;  %p2100_p2 = scmp.lt.u32.totalorder %s2098_s25, %s2093_s27 }
  0x63   : > { %p2096_p12 = pnand %p2095_p9, %p2094_p7  ;;  %p2102_p8 = scmp.lt.u32.totalorder %s2093_s27, %s2450_s10 }
  0x64   : > { %p2101_p4 = por %p2100_p2, %p2099_p1 }
  0x65   : > { %p2097_p0 = pneg %p2096_p12 }
  0x66   : > { %p2103_p13 = por %p2102_p8, %p2101_p4 }
  0x68   : > { %p2104_p6 = pnand %p2103_p13, %p2097_p0 }
  0x6a   : > { %2107 = shalt.err (!%p2104_p6)
}
  0x6b   : > { %s2108_s24 = scalar_lea.vmem %s2456_s17, 128  ;;  %s2236_s21 = smov [#allocation2]  }
  0x6c   : > { %p2109_p10 = scmp.ne.s32.totalorder %s2456_s17, %s2108_s24  ;;  %s2113_s14 = sshll.u32 %s2236_s21, 4  ;;  %s2114_s14 = int_to_ptr.vmem [resolvable:$false] %s2113_s14 }
  0x6d   : > { %s2115_s16 = scalar_lea.vmem %s2114_s14, 256  ;;  %p2116_p12 = scmp.lt.s32.totalorder %s2456_s17, %s2114_s14 }
  0x6e   : > { %p2111_p3 = pnand %p2109_p10, %p2095_p9  ;;  %p2117_p1 = scmp.lt.s32.totalorder %s2115_s16, %s2108_s24 }
  0x70   : > { %p2112_p7 = pneg %p2111_p3  ;;  %p2118_p2 = por %p2117_p1, %p2116_p12 }
  0x72   : > { %p2119_p4 = pnand %p2118_p2, %p2112_p7 }
  0x74   : > { %2122 = shalt.err (!%p2119_p4)
}
  0x75   : > { %1921 = dma.hbm_to_vmem [thread:$0]  (!%p2452_p11), %s2450_s10, 128, %s2456_s17, %s301_s18  }
  0x76   : > { %p2717_p0 = scmp.ne.s32.totalorder %s2711_s13, 0 }
  0x77   : > { %s2486_s27 = sand.u32 (!%p2717_p0), 1, %s2221_s28   ;;  %p2718_p9 = scmp.ne.s32.totalorder (!%p2717_p0), %s2708_s11, 0 }
  0x78   : > { %320 = sbr.rel (%p2717_p0) target bundleno = 1938 (0x792), region = 48  ;;  %s2489_s12 = sshll.u32 (!%p2717_p0), %s2486_s27, 3 }
  0x79   : > { %s323_s25 = scalar_lea.sflag (!%p2717_p0), [#allocation3], %s2486_s27  ;;  %s326_s20 = scalar_lea.vmem (!%p2717_p0), [#allocation2], %s2489_s12 }
  0x7f   : > { %2196 = dma.done.wait (%p2718_p9), %s323_s25, 128  }
  0x80   : > { %2198 = vsyncadd (%p2718_p9), %s323_s25, 4294967168  ;;  %p2719_p11 = scmp.eq.s32.totalorder %s2308_s9, 0 }
  0x82   : > { %2200 = dma.done.wait (%p2719_p11), [#allocation6], 12288   ;;  %p2720_p8 = pmov %p2719_p11 }
  0x84   : > { %2202 = vsyncadd (%p2720_p8), [#allocation6], 4294955008  ;;  %p2721_p13 = pmov %p2720_p8 }
  0x85   : > { %p2722_p6 = pmov %p2720_p8 }
  0x86   : > { %2204 = dma.done.wait (%p2721_p13), [#allocation9], 2048  }
  0x87   : > { %2206 = vsyncadd (%p2722_p6), [#allocation9], 4294965248  ;;  %v2237_v0 = vmov 0.0|0.0   ;;  %vm2238_vm0 = vmmov 0   ;;  %v2239_v1 = vmov 0.0   ;;  %v392_v2 = vld [vmem:[#allocation5] sm:$0xff] }
  0x88   : > { %1722 = vmatprep.subr.bf16.mxu0 %v2237_v0  ;;  %1509 = vmatprep.mubr.msk.f32.mxu0 %vm2238_vm0, %v2239_v1  ;;  %v393_v3 = vld [vmem:[#allocation5 + $0x8] sm:$0xff]  ;;  %v394_v4 = vld [vmem:[#allocation5 + $0x10] sm:$0xff]  ;;  %v395_v6 = vld [vmem:[#allocation5 + $0x18] sm:$0xff]  ;;  %s368_s21 = scalar_lea.vmem [#allocation10], %s2489_s12  ;;  %s1354_s11 = sshll.u32 %s2308_s9, 7 }
  0x89   : > { %1746 = vmatprep.subr.bf16.mxu1 %v2237_v0  ;;  %1544 = vmatprep.mubr.msk.f32.mxu1 %vm2238_vm0, %v2239_v1  ;;  %v1723_v5 = vpack.c.bf16 %v393_v3, %v392_v2  ;;  %v1726_v7 = vpack.c.bf16 %v395_v6, %v394_v4  ;;  %v396_v8 = vld [vmem:[#allocation5 + $0x20] sm:$0xff]  ;;  %v397_v9 = vld [vmem:[#allocation5 + $0x28] sm:$0xff]  ;;  %v2512_v10 = vld [vmem:[%s326_s20] sm:$0xff]  ;;  %s2618_s17 = scalar_lea.hbm %s2700_s7, %s1354_s11  ;;  %s1181_s15 = sshll.u32 %s368_s21, 4  ;;  %s1182_s15 = int_to_ptr.vmem [resolvable:$true] %s1181_s15 }
  0x8a   : > { %v378_v11 = vand.u32 2147483647, %v2512_v10  ;;  %v1729_v12 = vpack.c.bf16 %v397_v9, %v396_v8  ;;  %v398_v13 = vld [vmem:[#allocation5 + $0x30] sm:$0xff]  ;;  %v399_v14 = vld [vmem:[#allocation5 + $0x38] sm:$0xff]  ;;  %v400_v18 = vld [vmem:[#allocation5 + $0x40] sm:$0xff]  ;;  %v377_v37 = vmax.f32 %v2512_v10, 0.0 }
  0x8b   : > { %1724 = vmatpush3.bf16.msra.mxu0 %v1723_v5  ;;  %v1732_v17 = vpack.c.bf16 %v399_v14, %v398_v13  ;;  %v401_v19 = vld [vmem:[#allocation5 + $0x48] sm:$0xff]  ;;  %v402_v21 = vld [vmem:[#allocation5 + $0x50] sm:$0xff]  ;;  %v403_v22 = vld [vmem:[#allocation5 + $0x58] sm:$0xff]  ;;  %s1163_s18 = scalar_lea.sflag [#allocation4], %s2486_s27  ;;  %s2123_s19 = scalar_lea.vmem %s1182_s15, 128 }
  0x8c   : > { %1725 = vmatprep.subr.bf16.mxu0 %v2237_v0  ;;  %v379_v15 = vsub.f32 0.0, %v378_v11  ;;  %v1735_v20 = vpack.c.bf16 %v401_v19, %v400_v18  ;;  %v1738_v23 = vpack.c.bf16 %v403_v22, %v402_v21  ;;  %v404_v24 = vld [vmem:[#allocation5 + $0x60] sm:$0xff]  ;;  %v405_v25 = vld [vmem:[#allocation5 + $0x68] sm:$0xff]  ;;  %v406_v29 = vld [vmem:[#allocation5 + $0x70] sm:$0xff]  ;;  %p2124_p10 = scmp.ne.s32.totalorder %s1182_s15, %s2123_s19  ;;  %s2240_s24 = smov [#allocation10]  }
  0x8d   : > { %v1741_v27 = vpack.c.bf16 %v405_v25, %v404_v24  ;;  %v407_v30 = vld [vmem:[#allocation5 + $0x78] sm:$0xff]  ;;  %v500_v41 = vld [vmem:[#allocation7] sm:$0xff]  ;;  %v501_v42 = vld [vmem:[#allocation7 + $0x8] sm:$0xff]  ;;  %s2127_s14 = sshll.u32 %s2240_s24, 4  ;;  %s2128_s14 = int_to_ptr.vmem [resolvable:$false] %s2127_s14 }
  0x8e   : > { %v380_v16 = vmul.f32 1.442695, %v379_v15  ;;  %v1744_v32 = vpack.c.bf16 %v407_v30, %v406_v29  ;;  %v1747_v43 = vpack.c.bf16 %v501_v42, %v500_v41  ;;  %v502_v44 = vld [vmem:[#allocation7 + $0x10] sm:$0xff]  ;;  %v503_v45 = vld [vmem:[#allocation7 + $0x18] sm:$0xff]  ;;  %v504_v47 = vld [vmem:[#allocation7 + $0x20] sm:$0xff]  ;;  %p2125_p3 = pnand %p2124_p10, %p2441_p5  ;;  %s2129_s16 = scalar_lea.vmem %s2128_s14, 256 }
  0x8f   : > { %1727 = vmatpush3.bf16.msra.mxu0 %v1726_v7  ;;  %v1750_v46 = vpack.c.bf16 %v503_v45, %v502_v44  ;;  %v505_v48 = vld [vmem:[#allocation7 + $0x28] sm:$0xff]  ;;  %v506_v50 = vld [vmem:[#allocation7 + $0x30] sm:$0xff]  ;;  %v507_v51 = vld [vmem:[#allocation7 + $0x38] sm:$0xff]  ;;  %p2130_p12 = scmp.lt.s32.totalorder %s1182_s15, %s2128_s14  ;;  %p2131_p1 = scmp.lt.s32.totalorder %s2129_s16, %s2123_s19 }
  0x90   : > { %1728 = vmatprep.subr.bf16.mxu0 %v2237_v0  ;;  %1977 = vpow2.f32 %v380_v16  ;;  %1748 = vmatpush3.bf16.msra.mxu1 %v1747_v43  ;;  %v1753_v49 = vpack.c.bf16 %v505_v48, %v504_v47  ;;  %v1756_v52 = vpack.c.bf16 %v507_v51, %v506_v50  ;;  %v508_v53 = vld [vmem:[#allocation7 + $0x40] sm:$0xff]  ;;  %v509_v54 = vld [vmem:[#allocation7 + $0x48] sm:$0xff]  ;;  %v510_v56 = vld [vmem:[#allocation7 + $0x50] sm:$0xff]  ;;  %p2126_p7 = pneg %p2125_p3 }
  0x91   : > { %1749 = vmatprep.subr.bf16.mxu1 %v2237_v0  ;;  %v1759_v55 = vpack.c.bf16 %v509_v54, %v508_v53  ;;  %v511_v57 = vld [vmem:[#allocation7 + $0x58] sm:$0xff]  ;;  %v512_v59 = vld [vmem:[#allocation7 + $0x60] sm:$0xff]  ;;  %v513_v60 = vld [vmem:[#allocation7 + $0x68] sm:$0xff]  ;;  %p2132_p2 = por %p2131_p1, %p2130_p12 }
  0x92   : > { %v1762_v58 = vpack.c.bf16 %v511_v57, %v510_v56  ;;  %v1765_v61 = vpack.c.bf16 %v513_v60, %v512_v59  ;;  %v514_v62 = vld [vmem:[#allocation7 + $0x70] sm:$0xff]  ;;  %v515_v63 = vld [vmem:[#allocation7 + $0x78] sm:$0xff]  ;;  %v610_v22 = vld [vmem:[#allocation5 + $0x80] sm:$0xff] }
  0x93   : > { %1730 = vmatpush3.bf16.msra.mxu0 %v1729_v12  ;;  %v1768_v2 = vpack.c.bf16 %v515_v63, %v514_v62  ;;  %v1340_v3 = vld [vmem:[%s2695_s2] ss:$0 sm:$0xff]  ;;  %v615_v29 = vld [vmem:[#allocation5 + $0xa8] sm:$0xff]  ;;  %v625_v44 = vld [vmem:[#allocation5 + $0xf8] sm:$0xff]  ;;  %p2133_p4 = pnand %p2132_p2, %p2126_p7 }
  0x94   : > { %1731 = vmatprep.subr.bf16.mxu0 %v2237_v0  ;;  %1751 = vmatpush3.bf16.msra.mxu1 %v1750_v46  ;;  %v612_v25 = vld [vmem:[#allocation5 + $0x90] sm:$0xff]  ;;  %v623_v41 = vld [vmem:[#allocation5 + $0xe8] sm:$0xff] }
  0x95   : > { %1752 = vmatprep.subr.bf16.mxu1 %v2237_v0  ;;  %v624_v43 = vld [vmem:[#allocation5 + $0xf0] sm:$0xff] }
  0x96   : > { %v1792_v45 = vpack.c.bf16 %v625_v44, %v624_v43  ;;  %v1341_v46 = vld [vmem:[%s2697_s4] ss:$0 sm:$0xff] }
  0x97   : > { %1733 = vmatpush3.bf16.msra.mxu0 %v1732_v17 }
  0x98   : > { %1734 = vmatprep.subr.bf16.mxu0 %v2237_v0  ;;  %1754 = vmatpush3.bf16.msra.mxu1 %v1753_v49 }
  0x99   : > { %1755 = vmatprep.subr.bf16.mxu1 %v2237_v0 }
  0x9a   : > { %v1978_v26 = vpop.eup %1977 }
  0x9b   : > { %1736 = vmatpush3.bf16.msra.mxu0 %v1735_v20  ;;  %v382_v28 = vadd.f32 1.0, %v1978_v26  ;;  %v385_v31 = vmul.f32 -0.5, %v1978_v26  ;;  %v388_v34 = vand.u32 2147483647, %v1978_v26 }
  0x9c   : > { %1737 = vmatprep.subr.bf16.mxu0 %v2237_v0  ;;  %1757 = vmatpush3.bf16.msra.mxu1 %v1756_v52 }
  0x9d   : > { %1979 = vlog2.f32 %v382_v28  ;;  %v386_v33 = vadd.f32 1.0, %v385_v31  ;;  %vm389_vm1 = vcmp.lt.f32.partialorder %v388_v34, 0.0004427343  ;;  %1758 = vmatprep.subr.bf16.mxu1 %v2237_v0  ;;  %v614_v28 = vld [vmem:[#allocation5 + $0xa0] sm:$0xff]  ;;  %v616_v31 = vld [vmem:[#allocation5 + $0xb0] sm:$0xff] }
  0x9e   : > { %v1777_v30 = vpack.c.bf16 %v615_v29, %v614_v28  ;;  %v618_v34 = vld [vmem:[#allocation5 + $0xc0] sm:$0xff] }
  0x9f   : > { %1739 = vmatpush3.bf16.msra.mxu0 %v1738_v23  ;;  %v387_v35 = vmul.f32 %v1978_v26, %v386_v33  ;;  %v611_v23 = vld [vmem:[#allocation5 + $0x88] sm:$0xff]  ;;  %v613_v26 = vld [vmem:[#allocation5 + $0x98] sm:$0xff] }
  0xa0   : > { %1740 = vmatprep.subr.bf16.mxu0 %v2237_v0  ;;  %1760 = vmatpush3.bf16.msra.mxu1 %v1759_v55  ;;  %v1771_v24 = vpack.c.bf16 %v611_v23, %v610_v22  ;;  %v733_v22 = vld [vmem:[#allocation7 + $0xe8] sm:$0xff] }
  0xa1   : > { %1761 = vmatprep.subr.bf16.mxu1 %v2237_v0 }
  0xa3   : > { %1742 = vmatpush3.bf16.msra.mxu0 %v1741_v27  ;;  %v1774_v27 = vpack.c.bf16 %v613_v26, %v612_v25  ;;  %v735_v25 = vld [vmem:[#allocation7 + $0xf8] sm:$0xff] }
  0xa4   : > { %1743 = vmatprep.subr.bf16.mxu0 %v2237_v0  ;;  %1763 = vmatpush3.bf16.msra.mxu1 %v1762_v58 }
  0xa5   : > { %1764 = vmatprep.subr.bf16.mxu1 %v2237_v0 }
  0xa7   : > { %1745 = vmatpush3.bf16.msra.mxu0 %v1744_v32  ;;  %v1980_v36 = vpop.eup %1979  ;;  %v617_v32 = vld [vmem:[#allocation5 + $0xb8] sm:$0xff] }
  0xa8   : > { %1770 = vmatprep.subr.bf16.mxu0 %v2237_v0  ;;  %v384_v38 = vmul.f32 0.6931472, %v1980_v36  ;;  %1766 = vmatpush3.bf16.msra.mxu1 %v1765_v61  ;;  %v1780_v33 = vpack.c.bf16 %v617_v32, %v616_v31 }
  0xa9   : > { %1767 = vmatprep.subr.bf16.mxu1 %v2237_v0 }
  0xaa   : > { %v390_v39 = vsel %vm389_vm1, %v387_v35, %v384_v38  ;;  %v619_v35 = vld [vmem:[#allocation5 + $0xc8] sm:$0xff]  ;;  %v621_v38 = vld [vmem:[#allocation5 + $0xd8] sm:$0xff] }
  0xab   : > { %v391_v40 = vadd.f32 %v390_v39, %v377_v37  ;;  %v1783_v36 = vpack.c.bf16 %v619_v35, %v618_v34  ;;  %v620_v37 = vld [vmem:[#allocation5 + $0xd0] sm:$0xff] }
  0xac   : > { %1769 = vmatpush3.bf16.msra.mxu1 %v1768_v2  ;;  %v1786_v39 = vpack.c.bf16 %v621_v38, %v620_v37  ;;  %v720_v2 = vld [vmem:[#allocation7 + $0x80] sm:$0xff] }
  0xad   : > { %1510 = vmatmul.mubr.f32.vlgmr.msra.gmra.mrb[0].mxu0 %v391_v40  ;;  %1794 = vmatprep.subr.bf16.mxu1 %v2237_v0  ;;  %v622_v40 = vld [vmem:[#allocation5 + $0xe0] sm:$0xff] }
  0xae   : > { %1579 = vmatprep.mubr.msk.f32.mxu0 %vm2238_vm0, %v2239_v1  ;;  %1772 = vmatpush3.bf16.msra.mxu0 %v1771_v24  ;;  %v1789_v42 = vpack.c.bf16 %v623_v41, %v622_v40  ;;  %v734_v24 = vld [vmem:[#allocation7 + $0xf0] sm:$0xff] }
  0xaf   : > { %1773 = vmatprep.subr.bf16.mxu0 %v2237_v0  ;;  %v1816_v26 = vpack.c.bf16 %v735_v25, %v734_v24 }
  0xb2   : > { %1775 = vmatpush3.bf16.msra.mxu0 %v1774_v27  ;;  %v1343_v27 = vld [vmem:[%s2695_s2 + $0x1] ss:$0 sm:$0xff] }
  0xb3   : > { %1776 = vmatprep.subr.bf16.mxu0 %v2237_v0 }
  0xb6   : > { %1778 = vmatpush3.bf16.msra.mxu0 %v1777_v30 }
  0xb7   : > { %1779 = vmatprep.subr.bf16.mxu0 %v2237_v0 }
  0xba   : > { %1781 = vmatpush3.bf16.msra.mxu0 %v1780_v33 }
  0xbb   : > { %1782 = vmatprep.subr.bf16.mxu0 %v2237_v0 }
  0xbe   : > { %1784 = vmatpush3.bf16.msra.mxu0 %v1783_v36 }
  0xbf   : > { %1785 = vmatprep.subr.bf16.mxu0 %v2237_v0 }
  0xc2   : > { %1787 = vmatpush3.bf16.msra.mxu0 %v1786_v39 }
  0xc3   : > { %1788 = vmatprep.subr.bf16.mxu0 %v2237_v0 }
  0xc6   : > { %1790 = vmatpush3.bf16.msra.mxu0 %v1789_v42 }
  0xc7   : > { %1791 = vmatprep.subr.bf16.mxu0 %v2237_v0 }
  0xca   : > { %1793 = vmatpush3.bf16.msra.mxu0 %v1792_v45  ;;  %v832_v45 = vld [vmem:[#allocation5 + $0x100] sm:$0xff] }
  0xcb   : > { %1818 = vmatprep.subr.bf16.mxu0 %v2237_v0 }
 0x180   : > { %v481_v4 = vpop.f32.mrb[0].mxu0 }
 0x181   : > { %v482_v5 = vadd.f32 %v1340_v3, %v481_v4  ;;  %v1511_v6 = vpop.f32.mrb[1].mxu0  ;;  %v721_v3 = vld [vmem:[#allocation7 + $0x88] sm:$0xff] }
 0x182   : > { %v1795_v4 = vpack.c.bf16 %v721_v3, %v720_v2  ;;  %v723_v6 = vld [vmem:[#allocation7 + $0x98] sm:$0xff]  ;;  %v845_v2 = vld [vmem:[#allocation5 + $0x168] sm:$0xff] }
 0x183   : > { %v486_v7 = vand.u32 2147483647, %v482_v5  ;;  %v485_v19 = vmax.f32 %v482_v5, 0.0  ;;  %v722_v5 = vld [vmem:[#allocation7 + $0x90] sm:$0xff] }
 0x185   : > { %v487_v8 = vsub.f32 0.0, %v486_v7  ;;  %v1798_v7 = vpack.c.bf16 %v723_v6, %v722_v5  ;;  %v847_v5 = vld [vmem:[#allocation5 + $0x178] sm:$0xff] }
 0x187   : > { %v488_v9 = vmul.f32 1.442695, %v487_v8  ;;  %v724_v8 = vld [vmem:[#allocation7 + $0xa0] sm:$0xff] }
 0x189   : > { %1981 = vpow2.f32 %v488_v9  ;;  %v725_v9 = vld [vmem:[#allocation7 + $0xa8] sm:$0xff] }
 0x193   : > { %v1982_v11 = vpop.eup %1981 }
 0x194   : > { %v490_v12 = vadd.f32 1.0, %v1982_v11  ;;  %v493_v13 = vmul.f32 -0.5, %v1982_v11  ;;  %v496_v15 = vand.u32 2147483647, %v1982_v11 }
 0x196   : > { %1983 = vlog2.f32 %v490_v12  ;;  %v494_v14 = vadd.f32 1.0, %v493_v13  ;;  %vm497_vm2 = vcmp.lt.f32.partialorder %v496_v15, 0.0004427343  ;;  %v726_v12 = vld [vmem:[#allocation7 + $0xb0] sm:$0xff]  ;;  %v727_v13 = vld [vmem:[#allocation7 + $0xb8] sm:$0xff]  ;;  %v728_v15 = vld [vmem:[#allocation7 + $0xc0] sm:$0xff] }
 0x198   : > { %v495_v18 = vmul.f32 %v1982_v11, %v494_v14  ;;  %v1801_v11 = vpack.c.bf16 %v725_v9, %v724_v8  ;;  %v1804_v14 = vpack.c.bf16 %v727_v13, %v726_v12 }
 0x1a0   : > { %v1984_v16 = vpop.eup %1983 }
 0x1a1   : > { %v492_v17 = vmul.f32 0.6931472, %v1984_v16  ;;  %v729_v16 = vld [vmem:[#allocation7 + $0xc8] sm:$0xff] }
 0x1a3   : > { %v498_v20 = vsel %vm497_vm2, %v495_v18, %v492_v17  ;;  %v1807_v17 = vpack.c.bf16 %v729_v16, %v728_v15  ;;  %v730_v18 = vld [vmem:[#allocation7 + $0xd0] sm:$0xff] }
 0x1a4   : > { %v499_v21 = vadd.f32 %v498_v20, %v485_v19  ;;  %v731_v19 = vld [vmem:[#allocation7 + $0xd8] sm:$0xff] }
 0x1a5   : > { %v1810_v20 = vpack.c.bf16 %v731_v19, %v730_v18 }
 0x1a6   : > { %1545 = vmatmul.mubr.f32.vlgmr.msra.gmra.mrb[0].mxu1 %v499_v21  ;;  %v732_v21 = vld [vmem:[#allocation7 + $0xe0] sm:$0xff] }
 0x1a7   : > { %1614 = vmatprep.mubr.msk.f32.mxu1 %vm2238_vm0, %v2239_v1  ;;  %1796 = vmatpush3.bf16.msra.mxu1 %v1795_v4  ;;  %v1813_v23 = vpack.c.bf16 %v733_v22, %v732_v21  ;;  %v846_v4 = vld [vmem:[#allocation5 + $0x170] sm:$0xff] }
 0x1a8   : > { %1797 = vmatprep.subr.bf16.mxu1 %v2237_v0  ;;  %v1840_v6 = vpack.c.bf16 %v847_v5, %v846_v4  ;;  %v1052_v5 = vld [vmem:[#allocation8] sm:$0xff] }
 0x1ab   : > { %1799 = vmatpush3.bf16.msra.mxu1 %v1798_v7  ;;  %v1345_v7 = vld [vmem:[%s2697_s4 + $0x1] ss:$0 sm:$0xff] }
 0x1ac   : > { %1800 = vmatprep.subr.bf16.mxu1 %v2237_v0 }
 0x1af   : > { %1802 = vmatpush3.bf16.msra.mxu1 %v1801_v11 }
 0x1b0   : > { %1803 = vmatprep.subr.bf16.mxu1 %v2237_v0 }
 0x1b3   : > { %1805 = vmatpush3.bf16.msra.mxu1 %v1804_v14 }
 0x1b4   : > { %1806 = vmatprep.subr.bf16.mxu1 %v2237_v0 }
 0x1b7   : > { %1808 = vmatpush3.bf16.msra.mxu1 %v1807_v17 }
 0x1b8   : > { %1809 = vmatprep.subr.bf16.mxu1 %v2237_v0 }
 0x1bb   : > { %1811 = vmatpush3.bf16.msra.mxu1 %v1810_v20 }
 0x1bc   : > { %1812 = vmatprep.subr.bf16.mxu1 %v2237_v0 }
 0x1bf   : > { %1814 = vmatpush3.bf16.msra.mxu1 %v1813_v23 }
 0x1c0   : > { %1815 = vmatprep.subr.bf16.mxu1 %v2237_v0 }
 0x1c3   : > { %1817 = vmatpush3.bf16.msra.mxu1 %v1816_v26  ;;  %v942_v26 = vld [vmem:[#allocation7 + $0x100] sm:$0xff] }
 0x1c4   : > { %1842 = vmatprep.subr.bf16.mxu1 %v2237_v0 }
 0x279   : > { %v589_v47 = vpop.f32.mrb[0].mxu1 }
 0x27a   : > { %v590_v48 = vadd.f32 %v1341_v46, %v589_v47  ;;  %v1546_v49 = vpop.f32.mrb[1].mxu1  ;;  %v833_v46 = vld [vmem:[#allocation5 + $0x108] sm:$0xff] }
 0x27b   : > { %v1819_v47 = vpack.c.bf16 %v833_v46, %v832_v45  ;;  %v835_v49 = vld [vmem:[#allocation5 + $0x118] sm:$0xff]  ;;  %v956_v46 = vld [vmem:[#allocation7 + $0x170] sm:$0xff] }
 0x27c   : > { %v2550_v50 = vadd.f32 %v590_v48, %v2512_v10  ;;  %v834_v48 = vld [vmem:[#allocation5 + $0x110] sm:$0xff] }
 0x27e   : > { %v595_v51 = vand.u32 2147483647, %v2550_v50  ;;  %v594_v62 = vmax.f32 %v2550_v50, 0.0 }
 0x280   : > { %v596_v52 = vsub.f32 0.0, %v595_v51  ;;  %v1822_v51 = vpack.c.bf16 %v835_v49, %v834_v48  ;;  %v1347_v49 = vld [vmem:[%s2695_s2 + $0x2] ss:$0 sm:$0xff] }
 0x282   : > { %v597_v53 = vmul.f32 1.442695, %v596_v52  ;;  %v836_v52 = vld [vmem:[#allocation5 + $0x120] sm:$0xff] }
 0x284   : > { %1985 = vpow2.f32 %v597_v53  ;;  %v837_v53 = vld [vmem:[#allocation5 + $0x128] sm:$0xff] }
 0x28e   : > { %v1986_v54 = vpop.eup %1985 }
 0x28f   : > { %v599_v55 = vadd.f32 1.0, %v1986_v54  ;;  %v602_v56 = vmul.f32 -0.5, %v1986_v54  ;;  %v605_v58 = vand.u32 2147483647, %v1986_v54 }
 0x291   : > { %1987 = vlog2.f32 %v599_v55  ;;  %v603_v57 = vadd.f32 1.0, %v602_v56  ;;  %vm606_vm3 = vcmp.lt.f32.partialorder %v605_v58, 0.0004427343  ;;  %v838_v55 = vld [vmem:[#allocation5 + $0x130] sm:$0xff]  ;;  %v839_v56 = vld [vmem:[#allocation5 + $0x138] sm:$0xff]  ;;  %v840_v58 = vld [vmem:[#allocation5 + $0x140] sm:$0xff] }
 0x293   : > { %v604_v61 = vmul.f32 %v1986_v54, %v603_v57  ;;  %v1825_v54 = vpack.c.bf16 %v837_v53, %v836_v52  ;;  %v1828_v57 = vpack.c.bf16 %v839_v56, %v838_v55 }
 0x29b   : > { %v1988_v59 = vpop.eup %1987 }
 0x29c   : > { %v601_v60 = vmul.f32 0.6931472, %v1988_v59  ;;  %v841_v59 = vld [vmem:[#allocation5 + $0x148] sm:$0xff] }
 0x29e   : > { %v607_v63 = vsel %vm606_vm3, %v604_v61, %v601_v60  ;;  %v1831_v60 = vpack.c.bf16 %v841_v59, %v840_v58  ;;  %v842_v61 = vld [vmem:[#allocation5 + $0x150] sm:$0xff] }
 0x29f   : > { %v608_v10 = vadd.f32 %v607_v63, %v594_v62  ;;  %v843_v62 = vld [vmem:[#allocation5 + $0x158] sm:$0xff] }
 0x2a0   : > { %v1834_v63 = vpack.c.bf16 %v843_v62, %v842_v61 }
 0x2a1   : > { %1580 = vmatmul.mubr.f32.vlgmr.msra.gmra.mrb[2].mxu0 %v608_v10  ;;  %v844_v10 = vld [vmem:[#allocation5 + $0x160] sm:$0xff] }
 0x2a2   : > { %1649 = vmatprep.mubr.msk.f32.mxu0 %vm2238_vm0, %v2239_v1  ;;  %1820 = vmatpush3.bf16.msra.mxu0 %v1819_v47  ;;  %v1837_v3 = vpack.c.bf16 %v845_v2, %v844_v10  ;;  %v957_v47 = vld [vmem:[#allocation7 + $0x178] sm:$0xff] }
 0x2a3   : > { %1821 = vmatprep.subr.bf16.mxu0 %v2237_v0  ;;  %v1864_v48 = vpack.c.bf16 %v957_v47, %v956_v46 }
 0x2a6   : > { %1823 = vmatpush3.bf16.msra.mxu0 %v1822_v51 }
 0x2a7   : > { %1824 = vmatprep.subr.bf16.mxu0 %v2237_v0 }
 0x2aa   : > { %1826 = vmatpush3.bf16.msra.mxu0 %v1825_v54 }
 0x2ab   : > { %1827 = vmatprep.subr.bf16.mxu0 %v2237_v0 }
 0x2ae   : > { %1829 = vmatpush3.bf16.msra.mxu0 %v1828_v57 }
 0x2af   : > { %1830 = vmatprep.subr.bf16.mxu0 %v2237_v0 }
 0x2b2   : > { %1832 = vmatpush3.bf16.msra.mxu0 %v1831_v60 }
 0x2b3   : > { %1833 = vmatprep.subr.bf16.mxu0 %v2237_v0 }
 0x2b6   : > { %1835 = vmatpush3.bf16.msra.mxu0 %v1834_v63 }
 0x2b7   : > { %1836 = vmatprep.subr.bf16.mxu0 %v2237_v0 }
 0x2ba   : > { %1838 = vmatpush3.bf16.msra.mxu0 %v1837_v3 }
 0x2bb   : > { %1839 = vmatprep.subr.bf16.mxu0 %v2237_v0 }
 0x2be   : > { %1841 = vmatpush3.bf16.msra.mxu0 %v1840_v6  ;;  %v1053_v6 = vld [vmem:[#allocation8 + $0x8] sm:$0xff] }
 0x2bf   : > { %1866 = vmatprep.subr.bf16.mxu0 %v2237_v0 }
 0x374   : > { %v700_v28 = vpop.f32.mrb[2].mxu0 }
 0x375   : > { %v701_v29 = vadd.f32 %v1343_v27, %v700_v28  ;;  %v1581_v30 = vpop.f32.mrb[3].mxu0  ;;  %v943_v27 = vld [vmem:[#allocation7 + $0x108] sm:$0xff] }
 0x376   : > { %v1843_v28 = vpack.c.bf16 %v943_v27, %v942_v26  ;;  %v945_v30 = vld [vmem:[#allocation7 + $0x118] sm:$0xff]  ;;  %v1066_v27 = vld [vmem:[#allocation8 + $0x70] sm:$0xff] }
 0x377   : > { %v705_v31 = vand.u32 2147483647, %v701_v29  ;;  %v704_v42 = vmax.f32 %v701_v29, 0.0  ;;  %v944_v29 = vld [vmem:[#allocation7 + $0x110] sm:$0xff] }
 0x379   : > { %v706_v32 = vsub.f32 0.0, %v705_v31  ;;  %v1846_v31 = vpack.c.bf16 %v945_v30, %v944_v29  ;;  %v1349_v30 = vld [vmem:[%s2697_s4 + $0x2] ss:$0 sm:$0xff] }
 0x37b   : > { %v707_v33 = vmul.f32 1.442695, %v706_v32  ;;  %v946_v32 = vld [vmem:[#allocation7 + $0x120] sm:$0xff] }
 0x37d   : > { %1989 = vpow2.f32 %v707_v33  ;;  %v947_v33 = vld [vmem:[#allocation7 + $0x128] sm:$0xff] }
 0x387   : > { %v1990_v34 = vpop.eup %1989 }
 0x388   : > { %v709_v35 = vadd.f32 1.0, %v1990_v34  ;;  %v712_v36 = vmul.f32 -0.5, %v1990_v34  ;;  %v715_v38 = vand.u32 2147483647, %v1990_v34 }
 0x38a   : > { %1991 = vlog2.f32 %v709_v35  ;;  %v713_v37 = vadd.f32 1.0, %v712_v36  ;;  %vm716_vm4 = vcmp.lt.f32.partialorder %v715_v38, 0.0004427343  ;;  %v948_v35 = vld [vmem:[#allocation7 + $0x130] sm:$0xff]  ;;  %v951_v38 = vld [vmem:[#allocation7 + $0x148] sm:$0xff] }
 0x38c   : > { %v714_v41 = vmul.f32 %v1990_v34, %v713_v37  ;;  %v1849_v34 = vpack.c.bf16 %v947_v33, %v946_v32  ;;  %v950_v37 = vld [vmem:[#allocation7 + $0x140] sm:$0xff] }
 0x394   : > { %v1992_v39 = vpop.eup %1991 }
 0x395   : > { %v711_v40 = vmul.f32 0.6931472, %v1992_v39  ;;  %v1855_v39 = vpack.c.bf16 %v951_v38, %v950_v37 }
 0x397   : > { %v717_v43 = vsel %vm716_vm4, %v714_v41, %v711_v40  ;;  %v952_v40 = vld [vmem:[#allocation7 + $0x150] sm:$0xff]  ;;  %v953_v41 = vld [vmem:[#allocation7 + $0x158] sm:$0xff] }
 0x398   : > { %v718_v44 = vadd.f32 %v717_v43, %v704_v42  ;;  %v1858_v42 = vpack.c.bf16 %v953_v41, %v952_v40  ;;  %v954_v43 = vld [vmem:[#allocation7 + $0x160] sm:$0xff] }
 0x39a   : > { %1615 = vmatmul.mubr.f32.vlgmr.msra.gmra.mrb[2].mxu1 %v718_v44  ;;  %v955_v44 = vld [vmem:[#allocation7 + $0x168] sm:$0xff] }
 0x39b   : > { %1684 = vmatprep.mubr.msk.f32.mxu1 %vm2238_vm0, %v2239_v1  ;;  %1844 = vmatpush3.bf16.msra.mxu1 %v1843_v28  ;;  %v1861_v45 = vpack.c.bf16 %v955_v44, %v954_v43  ;;  %v1067_v28 = vld [vmem:[#allocation8 + $0x78] sm:$0xff] }
 0x39c   : > { %1845 = vmatprep.subr.bf16.mxu1 %v2237_v0  ;;  %v1888_v29 = vpack.c.bf16 %v1067_v28, %v1066_v27 }
 0x39f   : > { %1847 = vmatpush3.bf16.msra.mxu1 %v1846_v31 }
 0x3a0   : > { %1848 = vmatprep.subr.bf16.mxu1 %v2237_v0 }
 0x3a3   : > { %1850 = vmatpush3.bf16.msra.mxu1 %v1849_v34 }
 0x3a4   : > { %1851 = vmatprep.subr.bf16.mxu1 %v2237_v0 }
 0x46d   : > { %v810_v8 = vpop.f32.mrb[2].mxu1 }
 0x46e   : > { %v811_v9 = vadd.f32 %v1345_v7, %v810_v8  ;;  %v1616_v11 = vpop.f32.mrb[3].mxu1  ;;  %v1867_v7 = vpack.c.bf16 %v1053_v6, %v1052_v5  ;;  %v1054_v8 = vld [vmem:[#allocation8 + $0x10] sm:$0xff] }
 0x470   : > { %v2581_v12 = vadd.f32 %v811_v9, %v2550_v50  ;;  %v1055_v9 = vld [vmem:[#allocation8 + $0x18] sm:$0xff] }
 0x471   : > { %v1870_v11 = vpack.c.bf16 %v1055_v9, %v1054_v8 }
 0x472   : > { %v817_v13 = vand.u32 2147483647, %v2581_v12  ;;  %815 = vst [vmem:[%s368_s21] sm:$0xff] %v2581_v12  ;;  %v816_v50 = vmax.f32 %v2581_v12, 0.0 }
 0x474   : > { %v818_v14 = vsub.f32 0.0, %v817_v13  ;;  %v1056_v13 = vld [vmem:[#allocation8 + $0x20] sm:$0xff] }
 0x476   : > { %v819_v15 = vmul.f32 1.442695, %v818_v14  ;;  %v1057_v14 = vld [vmem:[#allocation8 + $0x28] sm:$0xff] }
 0x478   : > { %1993 = vpow2.f32 %v819_v15  ;;  %v1873_v15 = vpack.c.bf16 %v1057_v14, %v1056_v13 }
 0x482   : > { %v1994_v16 = vpop.eup %1993 }
 0x483   : > { %v821_v17 = vadd.f32 1.0, %v1994_v16  ;;  %v824_v18 = vmul.f32 -0.5, %v1994_v16  ;;  %v827_v20 = vand.u32 2147483647, %v1994_v16 }
 0x485   : > { %1995 = vlog2.f32 %v821_v17  ;;  %v825_v19 = vadd.f32 1.0, %v824_v18  ;;  %vm828_vm5 = vcmp.lt.f32.partialorder %v827_v20, 0.0004427343  ;;  %v1059_v17 = vld [vmem:[#allocation8 + $0x38] sm:$0xff]  ;;  %v1061_v20 = vld [vmem:[#allocation8 + $0x48] sm:$0xff] }
 0x487   : > { %v826_v23 = vmul.f32 %v1994_v16, %v825_v19  ;;  %v1058_v16 = vld [vmem:[#allocation8 + $0x30] sm:$0xff]  ;;  %v1060_v19 = vld [vmem:[#allocation8 + $0x40] sm:$0xff] }
 0x488   : > { %v1876_v18 = vpack.c.bf16 %v1059_v17, %v1058_v16 }
 0x48f   : > { %v1996_v21 = vpop.eup %1995 }
 0x490   : > { %v823_v22 = vmul.f32 0.6931472, %v1996_v21  ;;  %v1879_v21 = vpack.c.bf16 %v1061_v20, %v1060_v19 }
 0x492   : > { %v829_v24 = vsel %vm828_vm5, %v826_v23, %v823_v22  ;;  %v1062_v22 = vld [vmem:[#allocation8 + $0x50] sm:$0xff]  ;;  %v1063_v23 = vld [vmem:[#allocation8 + $0x58] sm:$0xff] }
 0x493   : > { %v830_v25 = vadd.f32 %v829_v24, %v816_v50  ;;  %v1882_v50 = vpack.c.bf16 %v1063_v23, %v1062_v22  ;;  %v1064_v24 = vld [vmem:[#allocation8 + $0x60] sm:$0xff] }
 0x495   : > { %1650 = vmatmul.mubr.f32.vlgmr.msra.gmra.mrb[4].mxu0 %v830_v25  ;;  %v1065_v25 = vld [vmem:[#allocation8 + $0x68] sm:$0xff] }
 0x496   : > { %1719 = vmatprep.mubr.msk.f32.mxu0 %vm2238_vm0, %v2239_v1  ;;  %v949_v1 = vld [vmem:[#allocation7 + $0x138] sm:$0xff]  ;;  %1868 = vmatpush3.bf16.msra.mxu0 %v1867_v7  ;;  %v1885_v26 = vpack.c.bf16 %v1065_v25, %v1064_v24 }
 0x497   : > { %v1852_v36 = vpack.c.bf16 %v949_v1, %v948_v35  ;;  %1869 = vmatprep.subr.bf16.mxu0 %v2237_v0 }
 0x499   : > { %1853 = vmatpush3.bf16.msra.mxu1 %v1852_v36 }
 0x49a   : > { %1854 = vmatprep.subr.bf16.mxu1 %v2237_v0  ;;  %1871 = vmatpush3.bf16.msra.mxu0 %v1870_v11 }
 0x49b   : > { %1872 = vmatprep.subr.bf16.mxu0 %v2237_v0 }
 0x49d   : > { %1856 = vmatpush3.bf16.msra.mxu1 %v1855_v39 }
 0x49e   : > { %1857 = vmatprep.subr.bf16.mxu1 %v2237_v0  ;;  %1874 = vmatpush3.bf16.msra.mxu0 %v1873_v15 }
 0x49f   : > { %1875 = vmatprep.subr.bf16.mxu0 %v2237_v0 }
 0x4a1   : > { %1859 = vmatpush3.bf16.msra.mxu1 %v1858_v42 }
 0x4a2   : > { %1860 = vmatprep.subr.bf16.mxu1 %v2237_v0  ;;  %1877 = vmatpush3.bf16.msra.mxu0 %v1876_v18 }
 0x4a3   : > { %1878 = vmatprep.subr.bf16.mxu0 %v2237_v0 }
 0x4a5   : > { %1862 = vmatpush3.bf16.msra.mxu1 %v1861_v45 }
 0x4a6   : > { %1863 = vmatprep.subr.bf16.mxu1 %v2237_v0  ;;  %1880 = vmatpush3.bf16.msra.mxu0 %v1879_v21 }
 0x4a7   : > { %1881 = vmatprep.subr.bf16.mxu0 %v2237_v0 }
 0x4a9   : > { %1865 = vmatpush3.bf16.msra.mxu1 %v1864_v48 }
 0x4aa   : > { %1883 = vmatpush3.bf16.msra.mxu0 %v1882_v50 }
 0x4ab   : > { %1884 = vmatprep.subr.bf16.mxu0 %v2237_v0 }
 0x4ae   : > { %1886 = vmatpush3.bf16.msra.mxu0 %v1885_v26 }
 0x4af   : > { %1887 = vmatprep.subr.bf16.mxu0 %v2237_v0 }
 0x4b2   : > { %1889 = vmatpush3.bf16.msra.mxu0 %v1888_v29 }
 0x568   : > { %v922_v51 = vpop.f32.mrb[4].mxu0 }
 0x569   : > { %v923_v52 = vadd.f32 %v1347_v49, %v922_v51  ;;  %v1651_v53 = vpop.f32.mrb[5].mxu0 }
 0x56b   : > { %v927_v54 = vand.u32 2147483647, %v923_v52  ;;  %v926_v2 = vmax.f32 %v923_v52, 0.0 }
 0x56d   : > { %v928_v55 = vsub.f32 0.0, %v927_v54 }
 0x56f   : > { %v929_v56 = vmul.f32 1.442695, %v928_v55 }
 0x571   : > { %1997 = vpow2.f32 %v929_v56 }
 0x57b   : > { %v1998_v57 = vpop.eup %1997 }
 0x57c   : > { %v931_v58 = vadd.f32 1.0, %v1998_v57  ;;  %v934_v59 = vmul.f32 -0.5, %v1998_v57  ;;  %v937_v61 = vand.u32 2147483647, %v1998_v57 }
 0x57e   : > { %1999 = vlog2.f32 %v931_v58  ;;  %v935_v60 = vadd.f32 1.0, %v934_v59  ;;  %vm938_vm6 = vcmp.lt.f32.partialorder %v937_v61, 0.0004427343 }
 0x580   : > { %v936_v10 = vmul.f32 %v1998_v57, %v935_v60 }
 0x588   : > { %v2000_v62 = vpop.eup %1999 }
 0x589   : > { %v933_v63 = vmul.f32 0.6931472, %v2000_v62 }
 0x58b   : > { %v939_v3 = vsel %vm938_vm6, %v936_v10, %v933_v63 }
 0x58c   : > { %v940_v4 = vadd.f32 %v939_v3, %v926_v2 }
 0x58e   : > { %1685 = vmatmul.mubr.f32.vlgmr.msra.gmra.mrb[4].mxu1 %v940_v4 }
 0x661   : > { %v1032_v31 = vpop.f32.mrb[4].mxu1 }
 0x662   : > { %v1033_v32 = vadd.f32 %v1349_v30, %v1032_v31  ;;  %v1686_v33 = vpop.f32.mrb[5].mxu1 }
 0x664   : > { %v1036_v34 = vadd.f32 %v1033_v32, %v2581_v12 }
 0x666   : > { %v1038_v35 = vand.u32 2147483647, %v1036_v34  ;;  %v1037_v44 = vmax.f32 %v1036_v34, 0.0 }
 0x668   : > { %v1039_v1 = vsub.f32 0.0, %v1038_v35 }
 0x66a   : > { %v1040_v36 = vmul.f32 1.442695, %v1039_v1 }
 0x66c   : > { %2001 = vpow2.f32 %v1040_v36 }
 0x676   : > { %v2002_v0 = vpop.eup %2001 }
 0x677   : > { %v1042_v37 = vadd.f32 1.0, %v2002_v0  ;;  %v1045_v38 = vmul.f32 -0.5, %v2002_v0  ;;  %v1048_v40 = vand.u32 2147483647, %v2002_v0 }
 0x679   : > { %2003 = vlog2.f32 %v1042_v37  ;;  %v1046_v39 = vadd.f32 1.0, %v1045_v38  ;;  %vm1049_vm7 = vcmp.lt.f32.partialorder %v1048_v40, 0.0004427343 }
 0x67b   : > { %v1047_v43 = vmul.f32 %v2002_v0, %v1046_v39 }
 0x683   : > { %v2004_v41 = vpop.eup %2003 }
 0x684   : > { %v1044_v42 = vmul.f32 0.6931472, %v2004_v41 }
 0x686   : > { %v1050_v12 = vsel %vm1049_vm7, %v1047_v43, %v1044_v42 }
 0x687   : > { %v1051_v45 = vadd.f32 %v1050_v12, %v1037_v44 }
 0x689   : > { %1720 = vmatmul.mubr.f32.vlgmr.msra.gmra.mrb[6].mxu0 %v1051_v45 }
 0x68a   : > { %2136 = shalt.err (!%p2133_p4)
}
 0x68b   : > { %s2137_s21 = scalar_lea.hbm %s2618_s17, 128  ;;  %s2141_s13 = scalar_lea.hbm %s2700_s7, 256 }
 0x68c   : > { %p2138_p0 = scmp.ne.s32.totalorder %s2618_s17, %s2137_s21  ;;  %p2142_p8 = scmp.lt.u32.totalorder %s2618_s17, %s2700_s7 }
 0x68d   : > { %p2143_p13 = scmp.lt.u32.totalorder %s2141_s13, %s2137_s21  ;;  %p2145_p10 = scmp.lt.u32.totalorder %s2137_s21, %s2618_s17 }
 0x68e   : > { %p2139_p9 = pnand %p2138_p0, %p2441_p5 }
 0x68f   : > { %p2144_p6 = por %p2143_p13, %p2142_p8 }
 0x690   : > { %p2140_p11 = pneg %p2139_p9 }
 0x691   : > { %p2146_p3 = por %p2145_p10, %p2144_p6 }
 0x693   : > { %p2147_p7 = pnand %p2146_p3, %p2140_p11 }
 0x695   : > { %2150 = shalt.err (!%p2147_p7)
}
 0x696   : > { %1904 = dma.vmem_to_hbm [thread:$0]  (%p2441_p5), %s1182_s15, 128, %s2618_s17, %s1163_s18   ;;  %v1350_v46 = vld [vmem:[%s2699_s6] ss:$0 sm:$0xff] }
 0x697   : > { %s375_s17 = scalar_lea.vmem [#allocation11], %s2489_s12  ;;  %s2649_s21 = scalar_lea.hbm %s2701_s8, %s1354_s11 }
 0x698   : > { %s1194_s15 = sshll.u32 %s375_s17, 4  ;;  %s1168_s25 = scalar_lea.sflag [#allocation12], %s2486_s27  ;;  %s2651_s15 = int_to_ptr.vmem [resolvable:$true] %s1194_s15 }
 0x699   : > { %s2151_s20 = scalar_lea.vmem %s2651_s15, 128  ;;  %s2241_s12 = smov [#allocation11]  }
 0x69a   : > { %p2152_p12 = scmp.ne.s32.totalorder %s2651_s15, %s2151_s20  ;;  %s2155_s13 = sshll.u32 %s2241_s12, 4  ;;  %s2156_s13 = int_to_ptr.vmem [resolvable:$false] %s2155_s13 }
 0x69b   : > { %s2157_s9 = scalar_lea.vmem %s2156_s13, 256  ;;  %p2158_p4 = scmp.lt.s32.totalorder %s2651_s15, %s2156_s13 }
 0x69c   : > { %p2153_p1 = pnand %p2152_p12, %p2441_p5  ;;  %p2159_p0 = scmp.lt.s32.totalorder %s2157_s9, %s2151_s20 }
 0x69e   : > { %p2154_p2 = pneg %p2153_p1  ;;  %p2160_p9 = por %p2159_p0, %p2158_p4 }
 0x6a0   : > { %p2161_p11 = pnand %p2160_p9, %p2154_p2 }
 0x75c   : > { %v1141_v47 = vpop.f32.mrb[6].mxu0 }
 0x75d   : > { %v1142_v48 = vadd.f32 %v1350_v46, %v1141_v47  ;;  %v1721_v49 = vpop.f32.mrb[7].mxu0 }
 0x75f   : > { %v1146_v51 = vand.u32 2147483647, %v1142_v48  ;;  %v1145_v62 = vmax.f32 %v1142_v48, 0.0 }
 0x761   : > { %v1147_v52 = vsub.f32 0.0, %v1146_v51 }
 0x763   : > { %v1148_v53 = vmul.f32 1.442695, %v1147_v52 }
 0x765   : > { %2005 = vpow2.f32 %v1148_v53 }
 0x76f   : > { %v2006_v54 = vpop.eup %2005 }
 0x770   : > { %v1150_v55 = vadd.f32 1.0, %v2006_v54  ;;  %v1153_v56 = vmul.f32 -0.5, %v2006_v54  ;;  %v1156_v58 = vand.u32 2147483647, %v2006_v54 }
 0x772   : > { %2007 = vlog2.f32 %v1150_v55  ;;  %v1154_v57 = vadd.f32 1.0, %v1153_v56  ;;  %vm1157_vm8 = vcmp.lt.f32.partialorder %v1156_v58, 0.0004427343 }
 0x774   : > { %v1155_v61 = vmul.f32 %v2006_v54, %v1154_v57 }
 0x77c   : > { %v2008_v59 = vpop.eup %2007 }
 0x77d   : > { %v1152_v60 = vmul.f32 0.6931472, %v2008_v59 }
 0x77f   : > { %v1158_v63 = vsel %vm1157_vm8, %v1155_v61, %v1152_v60 }
 0x780   : > { %v1159_v10 = vadd.f32 %v1158_v63, %v1145_v62 }
 0x782   : > { %v1351_v2 = vadd.f32 -0.6931472, %v1159_v10 }
 0x784   : > { %1161 = vst [vmem:[%s375_s17] sm:$0xff] %v1351_v2 }
 0x785   : > { %2164 = shalt.err (!%p2161_p11)
}
 0x786   : > { %s2165_s27 = scalar_lea.hbm %s2649_s21, 128  ;;  %s2169_s24 = scalar_lea.hbm %s2701_s8, 256 }
 0x787   : > { %p2166_p8 = scmp.ne.s32.totalorder %s2649_s21, %s2165_s27  ;;  %p2170_p10 = scmp.lt.u32.totalorder %s2649_s21, %s2701_s8 }
 0x788   : > { %p2171_p3 = scmp.lt.u32.totalorder %s2169_s24, %s2165_s27  ;;  %p2173_p12 = scmp.lt.u32.totalorder %s2165_s27, %s2649_s21 }
 0x789   : > { %p2167_p13 = pnand %p2166_p8, %p2441_p5 }
 0x78a   : > { %p2172_p7 = por %p2171_p3, %p2170_p10 }
 0x78b   : > { %p2168_p6 = pneg %p2167_p13 }
 0x78c   : > { %p2174_p1 = por %p2173_p12, %p2172_p7 }
 0x78e   : > { %p2175_p2 = pnand %p2174_p1, %p2168_p6 }
 0x790   : > { %2178 = shalt.err (!%p2175_p2)
}
 0x791   : > { %1905 = dma.vmem_to_hbm [thread:$0]  (%p2441_p5), %s2651_s15, 128, %s2649_s21, %s1168_s25  }
 0x792 PF: > { %s2723_s17 = sld [smem:[#allocation18_spill]]  ;;  %s2724_s18 = sld [smem:[#allocation19_spill]] }
 0x793   : > { %p2726_p0 = scmp.ge.s32.totalorder %s2229_s30, 2 }
 0x798   : > { %s1206_s16 = sand.u32 1, %s2723_s17   ;;  %p2725_p4 = scmp.ne.s32.totalorder %s2724_s18, 0 }
 0x799   : > { %s1207_s20 = scalar_lea.sflag [#allocation4], %s1206_s16 }
 0x79a   : > { %p1923_p9 = pnand %p2726_p0, %p2725_p4 }
 0x79c   : > { %2208 = dma.done.wait (!%p1923_p9), %s1207_s20, 128  }
 0x79d   : > { %2210 = vsyncadd (!%p1923_p9), %s1207_s20, 4294967168  ;;  %s1216_s12 = scalar_lea.sflag [#allocation12], %s1206_s16 }
 0x79e   : > { %2212 = dma.done.wait (!%p1923_p9), %s1216_s12, 128  }
 0x79f   : > { %2214 = vsyncadd (!%p1923_p9), %s1216_s12, 4294967168  ;;  %p27_p5 = scmp.ge.s32.totalorder %s2427_s26, 4   ;;  %s2727_s27 = smov %s2221_s28 }
 0x7a0   : > { %s2728_s28 = smov %s2225_s29  ;;  %s2729_s29 = smov %s2437_s22 }
 0x7a1   : > { %s2730_s30 = smov %s2427_s26  ;;  %29 = sbr.rel (!%p27_p5) target bundleno = 9 (0x9), region = 130 }
 0x7a8   :  { %1221 = vsyncpa [#allocation3], 1 }
 0x7a9   :  { %1223 = vsyncpa [#allocation3 + $0x1], 1 }
 0x7aa   :  { %1224 = vsyncpa [#allocation6], 1 }
 0x7ab   :  { %1225 = vsyncpa [#allocation9], 1 }
 0x7ac   :  { %1226 = vsyncpa [#allocation4], 1 }
 0x7ad   :  { %1228 = vsyncpa [#allocation4 + $0x1], 1 }
 0x7ae   :  { %1229 = vsyncpa [#allocation12], 1 }
 0x7af   :  { %1231 = vsyncpa [#allocation12 + $0x1], 1 }

</bundles_post_ra>
